<compile_context>
chip_gen: v7x
topology: tpu7x:2x2x1
jax: 0.10.0
libtpu: 0.0.40
codegen_flags: <defaults>
</compile_context>

<pallas_src>
import math

import jax
import jax.numpy as jnp
from jax import lax
from jax.experimental import pallas as pl
from jax.experimental.pallas import tpu as pltpu

# ----------------------------- model hyper-params -----------------------------
VOC_SIZE = 64
D = 128          # embedding dim = in_channel = out_channel
N_LAYER = 2      # n_encoder (scaled down from 6)
N_HEAD = 2       # scaled down from 8
QK_CH = 64       # qk_channel (as in the module)
V_CH = 64        # v_channel  (as in the module)
MID_CH = 256     # mid_channel (scaled down from 2048)
PAD_NUM = 0
LN_EPS = 1e-5
NEG_INF = 1.0e9

B, S = 2, 8
BS = B * S

_HQ = N_HEAD * QK_CH          # 128  (Q block width in fused QKV)
_HK = N_HEAD * QK_CH          # 128
_HV = N_HEAD * V_CH           # 128
_QKV_W = _HQ + _HK + _HV      # 384


def _layernorm(x):
    # PyTorch LayerNorm(elementwise_affine=False): biased variance, eps in sqrt.
    mean = jnp.mean(x, axis=-1, keepdims=True)
    var = jnp.mean((x - mean) ** 2, axis=-1, keepdims=True)
    return (x - mean) * lax.rsqrt(var + LN_EPS)


# --------------------------------- kernel -------------------------------------
def encoder_kernel(tokc_ref, tokr_ref, emb_ref, pe_ref,
                   wqkv_ref, wo_ref, w1_ref, w2_ref,
                   o_ref, x_sc, mask_sc):
    f32 = jnp.float32
    bf16 = jnp.bfloat16
    l = pl.program_id(0)

    # ---- grid step 0: embedding gather + PE add + attention-mask build -------
    @pl.when(l == 0)
    def _init():
        tok = tokc_ref[...]                                      # (BS,1) int32
        lane_ids = lax.broadcasted_iota(jnp.int32, (BS, VOC_SIZE), 1)
        onehot = (lane_ids == tok).astype(f32)                   # (BS, VOC)
        x0 = jnp.dot(onehot, emb_ref[...], preferred_element_type=f32)
        x_sc[...] = x0 + pe_ref[...]                             # (BS, D)

        # additive mask, stacked over (b, h) along sublanes -> (B*H*S, S)
        padc = (tok == PAD_NUM).astype(f32)                      # (BS,1)
        padr = (tokr_ref[...] == PAD_NUM).astype(f32)            # (B,S)
        tiles = []
        for b in range(B):
            col = padc[b * S:(b + 1) * S, :]                     # (S,1)
            row = padr[b:b + 1, :]                               # (1,S)
            mb = jnp.maximum(col, row) * (-NEG_INF)              # (S,S)
            tiles.extend([mb] * N_HEAD)
        mask_sc[...] = jnp.concatenate(tiles, axis=0)

    # ---- one encoder layer (this grid step's weights, DMA'd via BlockSpec) ---
    x = x_sc[...]                                                # (BS, D) f32

    # fused Q|K|V projection (scale folded into Q columns at prep time)
    qkv = jnp.dot(x.astype(bf16), wqkv_ref[...],
                  preferred_element_type=f32)                    # (BS, 384)
    qkvb = qkv.astype(bf16)                                      # single cast

    # per-(b,h) score tiles, stacked along sublanes for ONE batched softmax
    score_tiles = []
    for b in range(B):
        r = b * S
        for h in range(N_HEAD):
            q = qkvb[r:r + S, h * QK_CH:(h + 1) * QK_CH]                    # (S,64)
            k = qkvb[r:r + S, _HQ + h * QK_CH:_HQ + (h + 1) * QK_CH]        # (S,64)
            score_tiles.append(
                lax.dot_general(q, k, (((1,), (1,)), ((), ())),
                                preferred_element_type=f32))                # (S,S)
    scores = jnp.concatenate(score_tiles, axis=0) + mask_sc[...]            # (32,8)
    scores = scores - jnp.max(scores, axis=-1, keepdims=True)   # keep: NaN-safe
    p = jnp.exp(scores)
    p = p * pl.reciprocal(jnp.sum(p, axis=-1, keepdims=True), approx=True)
    pb = p.astype(bf16)                                          # single cast

    # p @ v per (b,h); heads -> lanes, batches -> sublanes => (BS, 128)
    att_rows = []
    for b in range(B):
        r = b * S
        heads = []
        for h in range(N_HEAD):
            idx = b * N_HEAD + h
            pt = pb[idx * S:(idx + 1) * S, :]                               # (S,S)
            v = qkvb[r:r + S, _HQ + _HK + h * V_CH:
                             _HQ + _HK + (h + 1) * V_CH]                    # (S,64)
            heads.append(jnp.dot(pt, v, preferred_element_type=f32))        # (S,64)
        att_rows.append(jnp.concatenate(heads, axis=-1))                    # (S,128)
    att = jnp.concatenate(att_rows, axis=0)                                 # (BS,128)

    # single fused, 128-deep output projection
    proj = jnp.dot(att.astype(bf16), wo_ref[...],
                   preferred_element_type=f32)                              # (BS,D)

    # residual + LayerNorm1
    x = _layernorm(x + proj)

    # feed-forward (Linear -> ReLU -> Linear) + residual + LayerNorm2
    h1 = jnp.maximum(jnp.dot(x.astype(bf16), w1_ref[...],
                             preferred_element_type=f32), 0.0)              # (BS,MID)
    ff = jnp.dot(h1.astype(bf16), w2_ref[...], preferred_element_type=f32)  # (BS,D)
    x = _layernorm(x + ff)

    x_sc[...] = x                                                # carry to next layer

    @pl.when(l == pl.num_programs(0) - 1)
    def _store():
        # Lane-dense store: (BS, 128) — full 128-lane rows, unmasked vst.
        o_ref[...] = x.astype(o_ref.dtype)


# ------------------------------ pallas wrapper ---------------------------------
def _run_encoder(tok_col, tok_row, emb, pe_bs, wqkv, wo, w1, w2):
    return pl.pallas_call(
        encoder_kernel,
        out_shape=jax.ShapeDtypeStruct((BS, D), jnp.float32),
        grid_spec=pltpu.PrefetchScalarGridSpec(
            num_scalar_prefetch=0,
            grid=(N_LAYER,),                          # layer axis: pipelined weights
            in_specs=[
                pl.BlockSpec((BS, 1), lambda l: (0, 0)),            # token ids (col)
                pl.BlockSpec((B, S), lambda l: (0, 0)),             # token ids (row)
                pl.BlockSpec((VOC_SIZE, D), lambda l: (0, 0)),      # embedding table
                pl.BlockSpec((BS, D), lambda l: (0, 0)),            # PE, pre-tiled
                pl.BlockSpec((None, D, _QKV_W), lambda l: (l, 0, 0)),   # fused QKV
                pl.BlockSpec((None, D, D), lambda l: (l, 0, 0)),        # Wo
                pl.BlockSpec((None, D, MID_CH), lambda l: (l, 0, 0)),   # FFN w1
                pl.BlockSpec((None, MID_CH, D), lambda l: (l, 0, 0)),   # FFN w2
            ],
            out_specs=pl.BlockSpec((BS, D), lambda l: (0, 0)),
            scratch_shapes=[
                pltpu.VMEM((BS, D), jnp.float32),                   # x carried across layers
                pltpu.VMEM((B * N_HEAD * S, S), jnp.float32),       # stacked additive mask
            ],
        ),
        compiler_params=pltpu.CompilerParams(
            dimension_semantics=("arbitrary",)),      # layer axis is sequential
    )(tok_col, tok_row, emb, pe_bs, wqkv, wo, w1, w2)


def prepare_params(emb, pe, wq, wk, wv, wo, w1, w2, seq_len):
    """One-time parameter prep (hoisted out of the per-call path)."""
    scale = 1.0 / math.sqrt(QK_CH)            # folded into Q columns (exact in bf16)
    wqkv = jnp.concatenate([wq * scale, wk, wv], axis=-1).astype(jnp.bfloat16)
    pe_bs = jnp.tile(pe[:seq_len], (B, 1)).astype(jnp.float32)      # (BS, D)
    return dict(
        emb=emb.astype(jnp.float32),
        pe_bs=pe_bs,
        wqkv=wqkv,                                   # (L, D, 384) bf16
        wo=wo.astype(jnp.bfloat16),                  # (L, 128, 128) bf16
        w1=w1.astype(jnp.bfloat16),                  # (L, D, MID) bf16
        w2=w2.astype(jnp.bfloat16),                  # (L, MID, D) bf16
    )


@jax.jit
def encoder_forward(tokens, params):
    Bt, St = tokens.shape
    tok_col = tokens.reshape(Bt * St, 1)             # only per-call XLA prep op
    out_flat = _run_encoder(tok_col, tokens, params["emb"], params["pe_bs"],
                            params["wqkv"], params["wo"],
                            params["w1"], params["w2"])
    return out_flat.reshape(Bt, St, D)


# ----------------------------- pure-JAX reference ------------------------------
def reference_forward(tokens, emb, pe, wq, wk, wv, wo, w1, w2):
    Bt, St = tokens.shape
    pad = tokens == PAD_NUM
    mask = jnp.where(pad[:, :, None] | pad[:, None, :], -NEG_INF, 0.0)
    x = emb[tokens] + pe[:St][None, :, :]
    for l in range(N_LAYER):
        Q = (x @ wq[l]).reshape(Bt, St, N_HEAD, QK_CH).transpose(0, 2, 1, 3)
        K = (x @ wk[l]).reshape(Bt, St, N_HEAD, QK_CH).transpose(0, 2, 1, 3)
        V = (x @ wv[l]).reshape(Bt, St, N_HEAD, V_CH).transpose(0, 2, 1, 3)
        w = jnp.einsum('bhqd,bhkd->bhqk', Q, K) / math.sqrt(QK_CH)
        w = jax.nn.softmax(w + mask[:, None, :, :], axis=-1)
        att = jnp.einsum('bhqk,bhkd->bhqd', w, V).transpose(0, 2, 1, 3)
        att = att.reshape(Bt, St, N_HEAD * V_CH)
        x = _layernorm(x + att @ wo[l])
        ff = jnp.maximum(x @ w1[l], 0.0) @ w2[l]
        x = _layernorm(x + ff)
    return x


def make_pe(max_len, d):
    pos = jnp.arange(max_len, dtype=jnp.float32)[:, None]
    div = jnp.exp(jnp.arange(0, d, 2, dtype=jnp.float32) * (-math.log(10000.0) / d))
    pe = jnp.zeros((max_len, d), jnp.float32)
    pe = pe.at[:, 0::2].set(jnp.sin(pos * div))
    pe = pe.at[:, 1::2].set(jnp.cos(pos * div))
    return pe


# ----------------------------------- main --------------------------------------
if __name__ == "__main__":
    key0 = jax.random.PRNGKey(0)
    ks = jax.random.split(key0, 10)

    def init_w(k, shape, fan_in):
        bound = 1.0 / math.sqrt(fan_in)
        return jax.random.uniform(k, shape, jnp.float32, -bound, bound)

    emb = jax.random.normal(ks[0], (VOC_SIZE, D), jnp.float32)   # nn.Embedding weight
    pe = make_pe(64, D)

    # per-layer stacked weights, stored transposed as (in, out) = W.T of nn.Linear
    wq = init_w(ks[1], (N_LAYER, D, N_HEAD * QK_CH), D)
    wk = init_w(ks[2], (N_LAYER, D, N_HEAD * QK_CH), D)
    wv = init_w(ks[3], (N_LAYER, D, N_HEAD * V_CH), D)
    wo = init_w(ks[4], (N_LAYER, N_HEAD * V_CH, D), N_HEAD * V_CH)
    w1 = init_w(ks[5], (N_LAYER, D, MID_CH), D)
    w2 = init_w(ks[6], (N_LAYER, MID_CH, D), MID_CH)

    tokens = jax.random.randint(ks[7], (B, S), 1, VOC_SIZE).astype(jnp.int32)
    tokens = tokens.at[0, -1].set(PAD_NUM)       # some padded positions
    tokens = tokens.at[1, -3:].set(PAD_NUM)

    # one-time parameter prep (fusion / casts / scale fold / PE tiling)
    params = jax.block_until_ready(
        prepare_params(emb, pe, wq, wk, wv, wo, w1, w2, S))

    out = encoder_forward(tokens, params)
    out = jax.block_until_ready(out)

    ref = reference_forward(tokens, emb, pe, wq, wk, wv, wo, w1, w2)
    assert out.shape == (B, S, D)
    # bf16 MXU operands in the kernel vs. f32 reference -> loose-ish tolerance
    assert jnp.allclose(out, ref, atol=5e-2, rtol=5e-2), "mismatch vs reference"

    print("KERNEL_OK")
</pallas_src>

<mosaic_0001>
module attributes {stable_mosaic.version = 11 : i64} {
  func.func @encoder_kernel(%arg0: i32, %arg1: memref<16x1xi32, #tpu.memory_space<vmem>>, %arg2: memref<2x8xi32, #tpu.memory_space<vmem>>, %arg3: memref<64x128xf32, #tpu.memory_space<vmem>>, %arg4: memref<16x128xf32, #tpu.memory_space<vmem>>, %arg5: memref<1x128x384xbf16, #tpu.memory_space<vmem>>, %arg6: memref<1x128x128xbf16, #tpu.memory_space<vmem>>, %arg7: memref<1x128x256xbf16, #tpu.memory_space<vmem>>, %arg8: memref<1x256x128xbf16, #tpu.memory_space<vmem>>, %arg9: memref<16x128xf32, #tpu.memory_space<vmem>>, %arg10: memref<16x128xf32, #tpu.memory_space<vmem>>, %arg11: memref<32x8xf32, #tpu.memory_space<vmem>>) attributes {dimension_semantics = [#tpu.dimension_semantics<arbitrary>], iteration_bounds = array<i64: 2>, scalar_prefetch = 0 : i64, scratch_operands = 2 : i64, tpu.core_type = #tpu.core_type<tc>, window_params = [{pipeline_mode = #tpu.pipeline_mode<synchronous>, transform_indices = @transform_0, window_bounds = array<i64: 16, 1>}, {pipeline_mode = #tpu.pipeline_mode<synchronous>, transform_indices = @transform_1, window_bounds = array<i64: 2, 8>}, {pipeline_mode = #tpu.pipeline_mode<synchronous>, transform_indices = @transform_2, window_bounds = array<i64: 64, 128>}, {pipeline_mode = #tpu.pipeline_mode<synchronous>, transform_indices = @transform_3, window_bounds = array<i64: 16, 128>}, {transform_indices = @transform_4, window_bounds = array<i64: 1, 128, 384>}, {transform_indices = @transform_5, window_bounds = array<i64: 1, 128, 128>}, {transform_indices = @transform_6, window_bounds = array<i64: 1, 128, 256>}, {transform_indices = @transform_7, window_bounds = array<i64: 1, 256, 128>}, {pipeline_mode = #tpu.pipeline_mode<synchronous>, transform_indices = @transform_8, window_bounds = array<i64: 16, 128>}]} {
    %c0_i32 = arith.constant 0 : i32
    %0 = arith.cmpi eq, %arg0, %c0_i32 : i32
    %1 = arith.extui %0 : i1 to i32
    %c0_i32_0 = arith.constant 0 : i32
    %2 = arith.cmpi ne, %1, %c0_i32_0 : i32
    scf.if %2 {
      %c0_43 = arith.constant 0 : index
      %c0_44 = arith.constant 0 : index
      %106 = vector.load %arg1[%c0_43, %c0_44] : memref<16x1xi32, #tpu.memory_space<vmem>>, vector<16x1xi32>
      %107 = tpu.iota {dimensions = array<i32: 1>} : vector<16x64xi32>
      %108 = vector.broadcast %106 : vector<16x1xi32> to vector<16x64xi32>
      %109 = arith.cmpi eq, %107, %108 : vector<16x64xi32>
      %110 = arith.extui %109 : vector<16x64xi1> to vector<16x64xi32>
      %111 = arith.sitofp %110 : vector<16x64xi32> to vector<16x64xf32>
      %c0_45 = arith.constant 0 : index
      %c0_46 = arith.constant 0 : index
      %112 = vector.load %arg3[%c0_45, %c0_46] : memref<64x128xf32, #tpu.memory_space<vmem>>, vector<64x128xf32>
      %cst_47 = arith.constant dense<0.000000e+00> : vector<16x128xf32>
      %113 = tpu.matmul %111, %112, %cst_47 {dimension_numbers = #tpu.dot_dimension_numbers<[1], [0], [0], [1], [0, 0, 1, 1], [], []>} : vector<16x64xf32>, vector<64x128xf32>, vector<16x128xf32> -> vector<16x128xf32>
      %c0_48 = arith.constant 0 : index
      %c0_49 = arith.constant 0 : index
      %114 = vector.load %arg4[%c0_48, %c0_49] : memref<16x128xf32, #tpu.memory_space<vmem>>, vector<16x128xf32>
      %115 = arith.addf %113, %114 : vector<16x128xf32>
      %c0_50 = arith.constant 0 : index
      %c0_51 = arith.constant 0 : index
      %116 = vector.load %arg10[%c0_50, %c0_51] : memref<16x128xf32, #tpu.memory_space<vmem>>, vector<16x128xf32>
      tpu.vector_store %arg10[%c0_50, %c0_51], %115 {strides = array<i32>} : memref<16x128xf32, #tpu.memory_space<vmem>>, vector<16x128xf32>,
      %c0_i32_52 = arith.constant 0 : i32
      %117 = vector.broadcast %c0_i32_52 : i32 to vector<16x1xi32>
      %118 = arith.cmpi eq, %106, %117 : vector<16x1xi32>
      %119 = arith.extui %118 : vector<16x1xi1> to vector<16x1xi32>
      %120 = arith.sitofp %119 : vector<16x1xi32> to vector<16x1xf32>
      %c0_53 = arith.constant 0 : index
      %c0_54 = arith.constant 0 : index
      %121 = vector.load %arg2[%c0_53, %c0_54] : memref<2x8xi32, #tpu.memory_space<vmem>>, vector<2x8xi32>
      %c0_i32_55 = arith.constant 0 : i32
      %122 = vector.broadcast %c0_i32_55 : i32 to vector<2x8xi32>
      %123 = arith.cmpi eq, %121, %122 : vector<2x8xi32>
      %124 = arith.extui %123 : vector<2x8xi1> to vector<2x8xi32>
      %125 = arith.sitofp %124 : vector<2x8xi32> to vector<2x8xf32>
      %126 = vector.extract_strided_slice %120 {offsets = [0, 0], sizes = [8, 1], strides = [1, 1]} : vector<16x1xf32> to vector<8x1xf32>
      %127 = vector.extract_strided_slice %125 {offsets = [0, 0], sizes = [1, 8], strides = [1, 1]} : vector<2x8xf32> to vector<1x8xf32>
      %128 = vector.broadcast %126 : vector<8x1xf32> to vector<8x8xf32>
      %129 = vector.broadcast %127 : vector<1x8xf32> to vector<8x8xf32>
      %130 = arith.maximumf %128, %129 : vector<8x8xf32>
      %cst_56 = arith.constant -1.000000e+09 : f32
      %131 = vector.broadcast %cst_56 : f32 to vector<8x8xf32>
      %132 = arith.mulf %130, %131 : vector<8x8xf32>
      %133 = vector.extract_strided_slice %120 {offsets = [8, 0], sizes = [8, 1], strides = [1, 1]} : vector<16x1xf32> to vector<8x1xf32>
      %134 = vector.extract_strided_slice %125 {offsets = [1, 0], sizes = [1, 8], strides = [1, 1]} : vector<2x8xf32> to vector<1x8xf32>
      %135 = vector.broadcast %133 : vector<8x1xf32> to vector<8x8xf32>
      %136 = vector.broadcast %134 : vector<1x8xf32> to vector<8x8xf32>
      %137 = arith.maximumf %135, %136 : vector<8x8xf32>
      %cst_57 = arith.constant -1.000000e+09 : f32
      %138 = vector.broadcast %cst_57 : f32 to vector<8x8xf32>
      %139 = arith.mulf %137, %138 : vector<8x8xf32>
      %140 = tpu.concatenate %132, %132, %139, %139 in 0 : vector<8x8xf32>, vector<8x8xf32>, vector<8x8xf32>, vector<8x8xf32> -> vector<32x8xf32>
      %c0_58 = arith.constant 0 : index
      %c0_59 = arith.constant 0 : index
      %141 = vector.load %arg11[%c0_58, %c0_59] : memref<32x8xf32, #tpu.memory_space<vmem>>, vector<32x8xf32>
      tpu.vector_store %arg11[%c0_58, %c0_59], %140 {strides = array<i32>} : memref<32x8xf32, #tpu.memory_space<vmem>>, vector<32x8xf32>,
    } else {
    }
    %c0 = arith.constant 0 : index
    %c0_1 = arith.constant 0 : index
    %3 = vector.load %arg10[%c0, %c0_1] : memref<16x128xf32, #tpu.memory_space<vmem>>, vector<16x128xf32>
    %4 = arith.truncf %3 : vector<16x128xf32> to vector<16x128xbf16>
    %c0_2 = arith.constant 0 : index
    %c0_3 = arith.constant 0 : index
    %c0_4 = arith.constant 0 : index
    %5 = vector.load %arg5[%c0_2, %c0_3, %c0_4] : memref<1x128x384xbf16, #tpu.memory_space<vmem>>, vector<1x128x384xbf16>
    %6 = vector.shape_cast %5 : vector<1x128x384xbf16> to vector<128x384xbf16>
    %cst = arith.constant dense<0.000000e+00> : vector<16x384xf32>
    %7 = tpu.matmul %4, %6, %cst {dimension_numbers = #tpu.dot_dimension_numbers<[1], [0], [0], [1], [0, 0, 1, 1], [], []>} : vector<16x128xbf16>, vector<128x384xbf16>, vector<16x384xf32> -> vector<16x384xf32>
    %8 = arith.truncf %7 : vector<16x384xf32> to vector<16x384xbf16>
    %9 = vector.extract_strided_slice %8 {offsets = [0, 0], sizes = [8, 64], strides = [1, 1]} : vector<16x384xbf16> to vector<8x64xbf16>
    %10 = vector.extract_strided_slice %8 {offsets = [0, 128], sizes = [8, 64], strides = [1, 1]} : vector<16x384xbf16> to vector<8x64xbf16>
    %cst_5 = arith.constant dense<0.000000e+00> : vector<8x8xf32>
    %11 = tpu.matmul %9, %10, %cst_5 {dimension_numbers = #tpu.dot_dimension_numbers<[1], [1], [0], [0], [0, 0, 1, 0], [], []>} : vector<8x64xbf16>, vector<8x64xbf16>, vector<8x8xf32> -> vector<8x8xf32>
    %12 = vector.extract_strided_slice %8 {offsets = [0, 64], sizes = [8, 64], strides = [1, 1]} : vector<16x384xbf16> to vector<8x64xbf16>
    %13 = vector.extract_strided_slice %8 {offsets = [0, 192], sizes = [8, 64], strides = [1, 1]} : vector<16x384xbf16> to vector<8x64xbf16>
    %cst_6 = arith.constant dense<0.000000e+00> : vector<8x8xf32>
    %14 = tpu.matmul %12, %13, %cst_6 {dimension_numbers = #tpu.dot_dimension_numbers<[1], [1], [0], [0], [0, 0, 1, 0], [], []>} : vector<8x64xbf16>, vector<8x64xbf16>, vector<8x8xf32> -> vector<8x8xf32>
    %15 = vector.extract_strided_slice %8 {offsets = [8, 0], sizes = [8, 64], strides = [1, 1]} : vector<16x384xbf16> to vector<8x64xbf16>
    %16 = vector.extract_strided_slice %8 {offsets = [8, 128], sizes = [8, 64], strides = [1, 1]} : vector<16x384xbf16> to vector<8x64xbf16>
    %cst_7 = arith.constant dense<0.000000e+00> : vector<8x8xf32>
    %17 = tpu.matmul %15, %16, %cst_7 {dimension_numbers = #tpu.dot_dimension_numbers<[1], [1], [0], [0], [0, 0, 1, 0], [], []>} : vector<8x64xbf16>, vector<8x64xbf16>, vector<8x8xf32> -> vector<8x8xf32>
    %18 = vector.extract_strided_slice %8 {offsets = [8, 64], sizes = [8, 64], strides = [1, 1]} : vector<16x384xbf16> to vector<8x64xbf16>
    %19 = vector.extract_strided_slice %8 {offsets = [8, 192], sizes = [8, 64], strides = [1, 1]} : vector<16x384xbf16> to vector<8x64xbf16>
    %cst_8 = arith.constant dense<0.000000e+00> : vector<8x8xf32>
    %20 = tpu.matmul %18, %19, %cst_8 {dimension_numbers = #tpu.dot_dimension_numbers<[1], [1], [0], [0], [0, 0, 1, 0], [], []>} : vector<8x64xbf16>, vector<8x64xbf16>, vector<8x8xf32> -> vector<8x8xf32>
    %21 = tpu.concatenate %11, %14, %17, %20 in 0 : vector<8x8xf32>, vector<8x8xf32>, vector<8x8xf32>, vector<8x8xf32> -> vector<32x8xf32>
    %c0_9 = arith.constant 0 : index
    %c0_10 = arith.constant 0 : index
    %22 = vector.load %arg11[%c0_9, %c0_10] : memref<32x8xf32, #tpu.memory_space<vmem>>, vector<32x8xf32>
    %23 = arith.addf %21, %22 : vector<32x8xf32>
    %cst_11 = arith.constant dense<0xFF800000> : vector<32xf32>
    %24 = vector.multi_reduction <maximumf>, %23, %cst_11 [1] : vector<32x8xf32> to vector<32xf32>
    %25 = vector.shape_cast %24 : vector<32xf32> to vector<32x1xf32>
    %26 = vector.broadcast %25 : vector<32x1xf32> to vector<32x8xf32>
    %27 = arith.subf %23, %26 : vector<32x8xf32>
    %28 = math.exp %27 : vector<32x8xf32>
    %cst_12 = arith.constant dense<0.000000e+00> : vector<32xf32>
    %29 = vector.multi_reduction <add>, %28, %cst_12 [1] : vector<32x8xf32> to vector<32xf32>
    %30 = vector.shape_cast %29 : vector<32xf32> to vector<32x1xf32>
    %31 = tpu.reciprocal %30 {approx = true} : vector<32x1xf32> -> vector<32x1xf32>
    %32 = vector.broadcast %31 : vector<32x1xf32> to vector<32x8xf32>
    %33 = arith.mulf %28, %32 : vector<32x8xf32>
    %34 = arith.truncf %33 : vector<32x8xf32> to vector<32x8xbf16>
    %35 = vector.extract_strided_slice %34 {offsets = [0, 0], sizes = [8, 8], strides = [1, 1]} : vector<32x8xbf16> to vector<8x8xbf16>
    %36 = vector.extract_strided_slice %8 {offsets = [0, 256], sizes = [8, 64], strides = [1, 1]} : vector<16x384xbf16> to vector<8x64xbf16>
    %cst_13 = arith.constant dense<0.000000e+00> : vector<8x64xf32>
    %37 = tpu.matmul %35, %36, %cst_13 {dimension_numbers = #tpu.dot_dimension_numbers<[1], [0], [0], [1], [0, 0, 1, 1], [], []>} : vector<8x8xbf16>, vector<8x64xbf16>, vector<8x64xf32> -> vector<8x64xf32>
    %38 = vector.extract_strided_slice %34 {offsets = [8, 0], sizes = [8, 8], strides = [1, 1]} : vector<32x8xbf16> to vector<8x8xbf16>
    %39 = vector.extract_strided_slice %8 {offsets = [0, 320], sizes = [8, 64], strides = [1, 1]} : vector<16x384xbf16> to vector<8x64xbf16>
    %cst_14 = arith.constant dense<0.000000e+00> : vector<8x64xf32>
    %40 = tpu.matmul %38, %39, %cst_14 {dimension_numbers = #tpu.dot_dimension_numbers<[1], [0], [0], [1], [0, 0, 1, 1], [], []>} : vector<8x8xbf16>, vector<8x64xbf16>, vector<8x64xf32> -> vector<8x64xf32>
    %41 = tpu.concatenate %37, %40 in 1 : vector<8x64xf32>, vector<8x64xf32> -> vector<8x128xf32>
    %42 = vector.extract_strided_slice %34 {offsets = [16, 0], sizes = [8, 8], strides = [1, 1]} : vector<32x8xbf16> to vector<8x8xbf16>
    %43 = vector.extract_strided_slice %8 {offsets = [8, 256], sizes = [8, 64], strides = [1, 1]} : vector<16x384xbf16> to vector<8x64xbf16>
    %cst_15 = arith.constant dense<0.000000e+00> : vector<8x64xf32>
    %44 = tpu.matmul %42, %43, %cst_15 {dimension_numbers = #tpu.dot_dimension_numbers<[1], [0], [0], [1], [0, 0, 1, 1], [], []>} : vector<8x8xbf16>, vector<8x64xbf16>, vector<8x64xf32> -> vector<8x64xf32>
    %45 = vector.extract_strided_slice %34 {offsets = [24, 0], sizes = [8, 8], strides = [1, 1]} : vector<32x8xbf16> to vector<8x8xbf16>
    %46 = vector.extract_strided_slice %8 {offsets = [8, 320], sizes = [8, 64], strides = [1, 1]} : vector<16x384xbf16> to vector<8x64xbf16>
    %cst_16 = arith.constant dense<0.000000e+00> : vector<8x64xf32>
    %47 = tpu.matmul %45, %46, %cst_16 {dimension_numbers = #tpu.dot_dimension_numbers<[1], [0], [0], [1], [0, 0, 1, 1], [], []>} : vector<8x8xbf16>, vector<8x64xbf16>, vector<8x64xf32> -> vector<8x64xf32>
    %48 = tpu.concatenate %44, %47 in 1 : vector<8x64xf32>, vector<8x64xf32> -> vector<8x128xf32>
    %49 = tpu.concatenate %41, %48 in 0 : vector<8x128xf32>, vector<8x128xf32> -> vector<16x128xf32>
    %50 = arith.truncf %49 : vector<16x128xf32> to vector<16x128xbf16>
    %c0_17 = arith.constant 0 : index
    %c0_18 = arith.constant 0 : index
    %c0_19 = arith.constant 0 : index
    %51 = vector.load %arg6[%c0_17, %c0_18, %c0_19] : memref<1x128x128xbf16, #tpu.memory_space<vmem>>, vector<1x128x128xbf16>
    %52 = vector.shape_cast %51 : vector<1x128x128xbf16> to vector<128x128xbf16>
    %cst_20 = arith.constant dense<0.000000e+00> : vector<16x128xf32>
    %53 = tpu.matmul %50, %52, %cst_20 {dimension_numbers = #tpu.dot_dimension_numbers<[1], [0], [0], [1], [0, 0, 1, 1], [], []>} : vector<16x128xbf16>, vector<128x128xbf16>, vector<16x128xf32> -> vector<16x128xf32>
    %54 = arith.addf %3, %53 : vector<16x128xf32>
    %cst_21 = arith.constant dense<0.000000e+00> : vector<16xf32>
    %55 = vector.multi_reduction <add>, %54, %cst_21 [1] : vector<16x128xf32> to vector<16xf32>
    %56 = vector.shape_cast %55 : vector<16xf32> to vector<16x1xf32>
    %cst_22 = arith.constant 1.280000e+02 : f32
    %57 = vector.broadcast %cst_22 : f32 to vector<16x1xf32>
    %58 = arith.divf %56, %57 : vector<16x1xf32>
    %59 = vector.broadcast %58 : vector<16x1xf32> to vector<16x128xf32>
    %60 = arith.subf %54, %59 : vector<16x128xf32>
    %61 = arith.mulf %60, %60 : vector<16x128xf32>
    %cst_23 = arith.constant dense<0.000000e+00> : vector<16xf32>
    %62 = vector.multi_reduction <add>, %61, %cst_23 [1] : vector<16x128xf32> to vector<16xf32>
    %63 = vector.shape_cast %62 : vector<16xf32> to vector<16x1xf32>
    %cst_24 = arith.constant 1.280000e+02 : f32
    %64 = vector.broadcast %cst_24 : f32 to vector<16x1xf32>
    %65 = arith.divf %63, %64 : vector<16x1xf32>
    %66 = vector.broadcast %58 : vector<16x1xf32> to vector<16x128xf32>
    %67 = arith.subf %54, %66 : vector<16x128xf32>
    %cst_25 = arith.constant 9.99999974E-6 : f32
    %68 = vector.broadcast %cst_25 : f32 to vector<16x1xf32>
    %69 = arith.addf %65, %68 : vector<16x1xf32>
    %70 = math.rsqrt %69 : vector<16x1xf32>
    %71 = vector.broadcast %70 : vector<16x1xf32> to vector<16x128xf32>
    %72 = arith.mulf %67, %71 : vector<16x128xf32>
    %73 = arith.truncf %72 : vector<16x128xf32> to vector<16x128xbf16>
    %c0_26 = arith.constant 0 : index
    %c0_27 = arith.constant 0 : index
    %c0_28 = arith.constant 0 : index
    %74 = vector.load %arg7[%c0_26, %c0_27, %c0_28] : memref<1x128x256xbf16, #tpu.memory_space<vmem>>, vector<1x128x256xbf16>
    %75 = vector.shape_cast %74 : vector<1x128x256xbf16> to vector<128x256xbf16>
    %cst_29 = arith.constant dense<0.000000e+00> : vector<16x256xf32>
    %76 = tpu.matmul %73, %75, %cst_29 {dimension_numbers = #tpu.dot_dimension_numbers<[1], [0], [0], [1], [0, 0, 1, 1], [], []>} : vector<16x128xbf16>, vector<128x256xbf16>, vector<16x256xf32> -> vector<16x256xf32>
    %cst_30 = arith.constant 0.000000e+00 : f32
    %77 = vector.broadcast %cst_30 : f32 to vector<16x256xf32>
    %78 = arith.maximumf %76, %77 : vector<16x256xf32>
    %79 = arith.truncf %78 : vector<16x256xf32> to vector<16x256xbf16>
    %c0_31 = arith.constant 0 : index
    %c0_32 = arith.constant 0 : index
    %c0_33 = arith.constant 0 : index
    %80 = vector.load %arg8[%c0_31, %c0_32, %c0_33] : memref<1x256x128xbf16, #tpu.memory_space<vmem>>, vector<1x256x128xbf16>
    %81 = vector.shape_cast %80 : vector<1x256x128xbf16> to vector<256x128xbf16>
    %cst_34 = arith.constant dense<0.000000e+00> : vector<16x128xf32>
    %82 = tpu.matmul %79, %81, %cst_34 {dimension_numbers = #tpu.dot_dimension_numbers<[1], [0], [0], [1], [0, 0, 1, 1], [], []>} : vector<16x256xbf16>, vector<256x128xbf16>, vector<16x128xf32> -> vector<16x128xf32>
    %83 = arith.addf %72, %82 : vector<16x128xf32>
    %cst_35 = arith.constant dense<0.000000e+00> : vector<16xf32>
    %84 = vector.multi_reduction <add>, %83, %cst_35 [1] : vector<16x128xf32> to vector<16xf32>
    %85 = vector.shape_cast %84 : vector<16xf32> to vector<16x1xf32>
    %cst_36 = arith.constant 1.280000e+02 : f32
    %86 = vector.broadcast %cst_36 : f32 to vector<16x1xf32>
    %87 = arith.divf %85, %86 : vector<16x1xf32>
    %88 = vector.broadcast %87 : vector<16x1xf32> to vector<16x128xf32>
    %89 = arith.subf %83, %88 : vector<16x128xf32>
    %90 = arith.mulf %89, %89 : vector<16x128xf32>
    %cst_37 = arith.constant dense<0.000000e+00> : vector<16xf32>
    %91 = vector.multi_reduction <add>, %90, %cst_37 [1] : vector<16x128xf32> to vector<16xf32>
    %92 = vector.shape_cast %91 : vector<16xf32> to vector<16x1xf32>
    %cst_38 = arith.constant 1.280000e+02 : f32
    %93 = vector.broadcast %cst_38 : f32 to vector<16x1xf32>
    %94 = arith.divf %92, %93 : vector<16x1xf32>
    %95 = vector.broadcast %87 : vector<16x1xf32> to vector<16x128xf32>
    %96 = arith.subf %83, %95 : vector<16x128xf32>
    %cst_39 = arith.constant 9.99999974E-6 : f32
    %97 = vector.broadcast %cst_39 : f32 to vector<16x1xf32>
    %98 = arith.addf %94, %97 : vector<16x1xf32>
    %99 = math.rsqrt %98 : vector<16x1xf32>
    %100 = vector.broadcast %99 : vector<16x1xf32> to vector<16x128xf32>
    %101 = arith.mulf %96, %100 : vector<16x128xf32>
    %c0_40 = arith.constant 0 : index
    %c0_41 = arith.constant 0 : index
    %102 = vector.load %arg10[%c0_40, %c0_41] : memref<16x128xf32, #tpu.memory_space<vmem>>, vector<16x128xf32>
    tpu.vector_store %arg10[%c0_40, %c0_41], %101 {strides = array<i32>} : memref<16x128xf32, #tpu.memory_space<vmem>>, vector<16x128xf32>,
    %c1_i32 = arith.constant 1 : i32
    %103 = arith.cmpi eq, %arg0, %c1_i32 : i32
    %104 = arith.extui %103 : i1 to i32
    %c0_i32_42 = arith.constant 0 : i32
    %105 = arith.cmpi ne, %104, %c0_i32_42 : i32
    scf.if %105 {
      %c0_43 = arith.constant 0 : index
      %c0_44 = arith.constant 0 : index
      %106 = vector.load %arg9[%c0_43, %c0_44] : memref<16x128xf32, #tpu.memory_space<vmem>>, vector<16x128xf32>
      tpu.vector_store %arg9[%c0_43, %c0_44], %101 {strides = array<i32>} : memref<16x128xf32, #tpu.memory_space<vmem>>, vector<16x128xf32>,
    } else {
    }
    return
  }
  func.func @transform_0(%arg0: i32) -> (i32, i32) {
    %c0_i32 = arith.constant 0 : i32
    %c0_i32_0 = arith.constant 0 : i32
    %c0_i32_1 = arith.constant 0 : i32
    return %c0_i32, %c0_i32_0 : i32, i32
  }
  func.func @transform_1(%arg0: i32) -> (i32, i32) {
    %c0_i32 = arith.constant 0 : i32
    %c0_i32_0 = arith.constant 0 : i32
    %c0_i32_1 = arith.constant 0 : i32
    return %c0_i32, %c0_i32_0 : i32, i32
  }
  func.func @transform_2(%arg0: i32) -> (i32, i32) {
    %c0_i32 = arith.constant 0 : i32
    %c0_i32_0 = arith.constant 0 : i32
    %c0_i32_1 = arith.constant 0 : i32
    return %c0_i32, %c0_i32_0 : i32, i32
  }
  func.func @transform_3(%arg0: i32) -> (i32, i32) {
    %c0_i32 = arith.constant 0 : i32
    %c0_i32_0 = arith.constant 0 : i32
    %c0_i32_1 = arith.constant 0 : i32
    return %c0_i32, %c0_i32_0 : i32, i32
  }
  func.func @transform_4(%arg0: i32) -> (i32, i32, i32) {
    %c0_i32 = arith.constant 0 : i32
    %c0_i32_0 = arith.constant 0 : i32
    %c0_i32_1 = arith.constant 0 : i32
    return %arg0, %c0_i32, %c0_i32_0 : i32, i32, i32
  }
  func.func @transform_5(%arg0: i32) -> (i32, i32, i32) {
    %c0_i32 = arith.constant 0 : i32
    %c0_i32_0 = arith.constant 0 : i32
    %c0_i32_1 = arith.constant 0 : i32
    return %arg0, %c0_i32, %c0_i32_0 : i32, i32, i32
  }
  func.func @transform_6(%arg0: i32) -> (i32, i32, i32) {
    %c0_i32 = arith.constant 0 : i32
    %c0_i32_0 = arith.constant 0 : i32
    %c0_i32_1 = arith.constant 0 : i32
    return %arg0, %c0_i32, %c0_i32_0 : i32, i32, i32
  }
  func.func @transform_7(%arg0: i32) -> (i32, i32, i32) {
    %c0_i32 = arith.constant 0 : i32
    %c0_i32_0 = arith.constant 0 : i32
    %c0_i32_1 = arith.constant 0 : i32
    return %arg0, %c0_i32, %c0_i32_0 : i32, i32, i32
  }
  func.func @transform_8(%arg0: i32) -> (i32, i32) {
    %c0_i32 = arith.constant 0 : i32
    %c0_i32_0 = arith.constant 0 : i32
    %c0_i32_1 = arith.constant 0 : i32
    return %c0_i32, %c0_i32_0 : i32, i32
  }
}

</mosaic_0001>

<bundles_post_ra>
// kernel: encoder_forward.1
= control target key start
LH: loop header
LB: loop body
LE: loop exit
PB: predicated region body
PF: predicated region fallthrough
CT: control target
= control target key end

     0   :  { %s3174_s0 = inlined_call_operand.vmem [shape: s32[16,1], index: 0, kind: input, shape index: {}]   ;;  %s3175_s1 = inlined_call_operand.vmem [shape: s32[2,8], index: 1, kind: input, shape index: {}]   ;;  %s3176_s2 = inlined_call_operand.hbm [shape: f32[64,128], index: 2, kind: input, shape index: {}]   ;;  %s3177_s3 = inlined_call_operand.vmem [shape: f32[16,128], index: 3, kind: input, shape index: {}]   ;;  %s3178_s4 = inlined_call_operand.hbm [shape: bf16[2,128,384], index: 4, kind: input, shape index: {}]   ;;  %s3179_s5 = inlined_call_operand.hbm [shape: bf16[2,128,128], index: 5, kind: input, shape index: {}]   ;;  %s3180_s6 = inlined_call_operand.hbm [shape: bf16[2,128,256], index: 6, kind: input, shape index: {}]   ;;  %s3181_s7 = inlined_call_operand.hbm [shape: bf16[2,256,128], index: 7, kind: input, shape index: {}]   ;;  %s3182_s8 = inlined_call_operand.hbm [shape: f32[16,128], index: 8, kind: output, shape index: {}]  }
   0x1   :  { %3195 = sst [smem:[#allocation21_spill]] %s3178_s4 }
   0x2   :  { %3196 = sst [smem:[#allocation22_spill]] %s3180_s6 }
   0x3   :  { %13 = vsyncpa [#allocation5], 0 }
   0x4   :  { %14 = vsyncpa [#allocation8], 0 }
   0x5   :  { %16 = vsyncpa [#allocation8 + $0x1], 0 }
   0x6   :  { %17 = vsyncpa [#allocation11], 0 }
   0x7   :  { %19 = vsyncpa [#allocation11 + $0x1], 0 }
   0x8   :  { %20 = vsyncpa [#allocation6], 0  ;;  %s2700_s27 = smov 0   ;;  %s2702_s28 = smov 0  }
   0x9   :  { %s2704_s29 = smov 0   ;;  %s2706_s30 = smov 0  }
   0xa LB: > { %3197 = sst [smem:[#allocation18_spill]] %s2629_s29  ;;  %s2721_s9 = sadd.s32 1, %s2633_s30   ;;  %s2633_s30 = sphi %s2706_s30, %s3216_s30   ;;  %s2629_s29 = sphi %s2704_s29, %s3218_s29   ;;  %s2625_s28 = sphi %s2702_s28, %s3220_s28   ;;  %s2621_s27 = sphi %s2700_s27, %s3219_s27  }
   0xb   : > { %3198 = sst [smem:[#allocation19_spill]] %s2721_s9  ;;  %s117_s10 = sadd.s32 1, %s2629_s29 }
   0xc   : > { %s114_s11 = ssub.s32 %s2633_s30, %s2721_s9  ;;  %p124_p0 = scmp.ne.s32.totalorder %s2629_s29, %s2625_s28 }
   0xd   : > { %p115_p1 = scmp.eq.s32.totalorder %s114_s11, 0  ;;  %p125_p2 = scmp.eq.s32.totalorder %s2633_s30, 0 }
   0xe   : > { %p2245_p3 = scmp.lt.s32.totalorder %s2633_s30, 2  ;;  %s275_s13 = sand.u32 1, %s2633_s30  }
   0xf   : > { %s2731_s12 = scalar_select %p115_p1, %s2629_s29, %s117_s10  }
  0x10   : > { %p126_p4 = por %p125_p2, %p124_p0  ;;  %s2735_s14 = sand.u32 1, %s2629_s29  }
  0x11   : > { %3199 = sst [smem:[#allocation20_spill]] %s2731_s12  ;;  %s2208_s15 = smul.u32 192, %s2735_s14 }
  0x12   : > { %p2738_p5 = pnand %p2245_p3, %p126_p4  ;;  %s2209_s17 = smul.u32 3072, %s2633_s30 }
  0x13   : > { %s3201_s4 = sld [smem:[#allocation21_spill]]  ;;  %s279_s21 = scalar_lea.vmem [#allocation7], %s2208_s15 }
  0x14   : > { %s3200_s16 = scalar_select %p2738_p5, 1, 0 }
  0x15   : > { %s286_s22 = sshll.u32 %s279_s21, 4  ;;  %s2752_s23 = scalar_lea.sflag [#allocation8], %s275_s13  ;;  %s2748_s22 = int_to_ptr.vmem [resolvable:$true] %s286_s22 }
  0x16   : > { %p2758_p7 = pneg %p2738_p5 }
  0x18   : > { %s3202_s25 = scalar_select %p2758_p7, 1, 0 }
  0x19   : > { %s2746_s20 = scalar_lea.hbm %s3201_s4, %s2209_s17  ;;  %s2418_s11 = scalar_lea.hbm %s3201_s4, 6144 }
  0x1a   : > { %s2413_s24 = scalar_lea.hbm %s2746_s20, 3072  ;;  %p2419_p10 = scmp.lt.u32.totalorder %s2746_s20, %s3201_s4 }
  0x1b   : > { %p2414_p6 = scmp.ne.s32.totalorder %s2746_s20, %s2413_s24  ;;  %p2420_p11 = scmp.lt.u32.totalorder %s2418_s11, %s2413_s24 }
  0x1c   : > { %p2422_p13 = scmp.lt.u32.totalorder %s2413_s24, %s2746_s20 }
  0x1d   : > { %p2416_p8 = pnand %p2758_p7, %p2414_p6  ;;  %p2421_p12 = por %p2420_p11, %p2419_p10 }
  0x1f   : > { %p2417_p9 = pneg %p2416_p8  ;;  %p2423_p0 = por %p2422_p13, %p2421_p12 }
  0x21   : > { %p2424_p1 = pnand %p2423_p0, %p2417_p9 }
  0x23   : > { %2427 = shalt.err (!%p2424_p1)
}
  0x24   : > { %s2428_s18 = scalar_lea.vmem %s2748_s22, 3072  ;;  %s2635_s19 = smov [#allocation7]  }
  0x25   : > { %p2429_p2 = scmp.ne.s32.totalorder %s2748_s22, %s2428_s18  ;;  %s2433_s21 = sshll.u32 %s2635_s19, 4  ;;  %s2434_s21 = int_to_ptr.vmem [resolvable:$false] %s2433_s21 }
  0x26   : > { %s2435_s26 = scalar_lea.vmem %s2434_s21, 6144  ;;  %p2436_p6 = scmp.lt.s32.totalorder %s2748_s22, %s2434_s21 }
  0x27   : > { %p2431_p3 = pnand %p2429_p2, %p2758_p7  ;;  %p2437_p8 = scmp.lt.s32.totalorder %s2435_s26, %s2428_s18 }
  0x29   : > { %p2432_p4 = pneg %p2431_p3  ;;  %p2438_p10 = por %p2437_p8, %p2436_p6 }
  0x2b   : > { %p2439_p11 = pnand %p2438_p10, %p2432_p4 }
  0x2d   : > { %2442 = shalt.err (!%p2439_p11)
}
  0x2e   : > { %s2636_s24 = smov 192   ;;  %s2637_s10 = smov 12  }
  0x2f   : > { %2234 = dma.hbm_to_vmem [thread:$0]  (!%p2738_p5), %s2746_s20, 3072, %s2748_s22, %s2752_s23, %s2636_s24, %s2636_s24, %s2637_s10  }
  0x30   : > { %s1920_s11 = sshll.u32 %s2735_s14, 7  ;;  %s2017_s15 = sshll.u32 %s2633_s30, 11 }
  0x31   : > { %s3203_s6 = sld [smem:[#allocation22_spill]]  ;;  %s321_s21 = scalar_lea.vmem [#allocation10], %s1920_s11 }
  0x32   : > { %s328_s26 = sshll.u32 %s321_s21, 4  ;;  %s2797_s4 = scalar_lea.sflag [#allocation11], %s275_s13  ;;  %s2793_s26 = int_to_ptr.vmem [resolvable:$true] %s328_s26 }
  0x37   : > { %s2789_s19 = scalar_lea.hbm %s3203_s6, %s2017_s15  ;;  %s2448_s10 = scalar_lea.hbm %s3203_s6, 4096 }
  0x38   : > { %s2443_s20 = scalar_lea.hbm %s2789_s19, 2048  ;;  %p2449_p0 = scmp.lt.u32.totalorder %s2789_s19, %s3203_s6 }
  0x39   : > { %p2444_p9 = scmp.ne.s32.totalorder %s2789_s19, %s2443_s20  ;;  %p2450_p1 = scmp.lt.u32.totalorder %s2448_s10, %s2443_s20 }
  0x3a   : > { %p2452_p3 = scmp.lt.u32.totalorder %s2443_s20, %s2789_s19 }
  0x3b   : > { %p2446_p12 = pnand %p2444_p9, %p2758_p7  ;;  %p2451_p2 = por %p2450_p1, %p2449_p0 }
  0x3d   : > { %p2447_p13 = pneg %p2446_p12  ;;  %p2453_p4 = por %p2452_p3, %p2451_p2 }
  0x3f   : > { %p2454_p6 = pnand %p2453_p4, %p2447_p13 }
  0x41   : > { %2457 = shalt.err (!%p2454_p6)
}
  0x42   : > { %s2458_s13 = scalar_lea.vmem %s2793_s26, 2048  ;;  %s2638_s21 = smov [#allocation10]  }
  0x43   : > { %p2459_p8 = scmp.ne.s32.totalorder %s2793_s26, %s2458_s13  ;;  %s2463_s22 = sshll.u32 %s2638_s21, 4  ;;  %s2464_s22 = int_to_ptr.vmem [resolvable:$false] %s2463_s22 }
  0x44   : > { %s2465_s24 = scalar_lea.vmem %s2464_s22, 4096  ;;  %p2466_p9 = scmp.lt.s32.totalorder %s2793_s26, %s2464_s22 }
  0x45   : > { %p2461_p10 = pnand %p2459_p8, %p2758_p7  ;;  %p2467_p12 = scmp.lt.s32.totalorder %s2465_s24, %s2458_s13 }
  0x47   : > { %p2462_p11 = pneg %p2461_p10  ;;  %p2468_p0 = por %p2467_p12, %p2466_p9 }
  0x49   : > { %p2469_p1 = pnand %p2468_p0, %p2462_p11 }
  0x4b   : > { %2472 = shalt.err (!%p2469_p1)
}
  0x4c   : > { %s3183_s20 = smov 128   ;;  %s3184_s10 = smov 8  }
  0x4d   : > { %2240 = dma.hbm_to_vmem [thread:$0]  (!%p2738_p5), %s2789_s19, 2048, %s2793_s26, %s2797_s4, %s3183_s20, %s3183_s20, %s3184_s10  }
  0x4e   : > { %s2829_s13 = scalar_lea.hbm %s3181_s7, %s2017_s15  ;;  %s342_s21 = scalar_lea.vmem [#allocation12], %s1920_s11 }
  0x4f   : > { %s349_s22 = sshll.u32 %s342_s21, 4  ;;  %s2836_s24 = sadd.s32 4294967295, %s2633_s30   ;;  %s2833_s22 = int_to_ptr.vmem [resolvable:$true] %s349_s22 }
  0x50   : > { %p130_p13 = scmp.ne.s32.totalorder %s2625_s28, %s2621_s27  ;;  %p3188_p2 = scmp.eq.s32.totalorder %s2836_s24, 0 }
  0x51   : > { %p1913_p3 = scmp.ge.s32.totalorder %s2633_s30, 1  ;;  %p240_p4 = scmp.lt.s32.totalorder %s2633_s30, 3 }
  0x52   : > { %p2845_p6 = por %p3188_p2, %p130_p13  ;;  %s2641_s19 = smov [#allocation4]  }
  0x53   : > { %p2850_p10 = pnand %p1913_p3, %p240_p4  ;;  %s258_s26 = sshll.u32 %s2641_s19, 4  ;;  %s259_s26 = int_to_ptr.vmem [resolvable:$true] %s258_s26 }
  0x54   : > { %s3204_s15 = scalar_select %p2845_p6, 1, 0 }
  0x55   : > { %s3205_s11 = scalar_select %p2850_p10, 1, 0 }
  0x56   : > { %s1917_s17 = sshll.u32 %s2735_s14, 6  ;;  %p2227_p11 = pneg %p2850_p10 }
  0x57   : > { %s2016_s27 = sshll.u32 %s2633_s30, 10  ;;  %s300_s6 = scalar_lea.vmem [#allocation9], %s1917_s17 }
  0x58   : > { %p2860_p9 = pnand %p2227_p11, %p3188_p2  ;;  %s2867_s10 = scalar_lea.hbm %s3179_s5, %s2016_s27 }
  0x59   : > { %s307_s12 = sshll.u32 %s300_s6, 4  ;;  %s2473_s29 = scalar_lea.hbm %s3176_s2, 1024  ;;  %s2869_s12 = int_to_ptr.vmem [resolvable:$true] %s307_s12 }
  0x5a   : > { %p2474_p12 = scmp.ne.s32.totalorder %s3176_s2, %s2473_s29  ;;  %p2475_p0 = pneg %p2860_p9 }
  0x5b   : > { %p2480_p3 = scmp.lt.u32.totalorder %s2473_s29, %s3176_s2 }
  0x5c   : > { %p2476_p1 = pnand %p2475_p0, %p2474_p12 }
  0x5e   : > { %p2477_p13 = pneg %p2476_p1 }
  0x60   : > { %p2482_p4 = pnand %p2480_p3, %p2477_p13 }
  0x62   : > { %2485 = shalt.err (!%p2482_p4)
}
  0x63   : > { %s2486_s6 = scalar_lea.vmem %s259_s26, 1024  ;;  %p2494_p6 = scmp.lt.s32.totalorder %s259_s26, %s259_s26 }
  0x64   : > { %p2487_p11 = scmp.ne.s32.totalorder %s259_s26, %s2486_s6  ;;  %p2495_p10 = scmp.lt.s32.totalorder %s2486_s6, %s2486_s6 }
  0x66   : > { %p2489_p8 = pnand %p2487_p11, %p2475_p0  ;;  %p2496_p5 = por %p2495_p10, %p2494_p6 }
  0x68   : > { %p2490_p2 = pneg %p2489_p8 }
  0x6a   : > { %p2497_p7 = pnand %p2496_p5, %p2490_p2 }
  0x6c   : > { %2500 = shalt.err (!%p2497_p7)
}
  0x6d   : > { %s3207_s9 = smov 8   ;;  %s3208_s17 = smov 128  }
  0x6e   : > { %2230 = dma.hbm_to_vmem [thread:$0]  (!%p2860_p9), %s3176_s2, 1024, %s259_s26, [#allocation5], %s3208_s17, %s3208_s17, %s3207_s9  }
  0x6f   : > { %s2501_s29 = scalar_lea.hbm %s2867_s10, 1024  ;;  %p3209_p12 = scmp.ne.s32.totalorder %s3202_s25, 0 }
  0x70   : > { %p2502_p8 = scmp.ne.s32.totalorder %s2867_s10, %s2501_s29  ;;  %s2506_s18 = scalar_lea.hbm %s3179_s5, 2048 }
  0x71   : > { %p2507_p7 = scmp.lt.u32.totalorder %s2867_s10, %s3179_s5  ;;  %p2508_p2 = scmp.lt.u32.totalorder %s2506_s18, %s2501_s29 }
  0x72   : > { %p2504_p6 = pnand %p2502_p8, %p3209_p12  ;;  %p2510_p0 = scmp.lt.u32.totalorder %s2501_s29, %s2867_s10 }
  0x73   : > { %p2509_p10 = por %p2508_p2, %p2507_p7 }
  0x74   : > { %p2505_p5 = pneg %p2504_p6 }
  0x75   : > { %p2511_p1 = por %p2510_p0, %p2509_p10 }
  0x77   : > { %p2512_p13 = pnand %p2511_p1, %p2505_p5 }
  0x79   : > { %2515 = shalt.err (!%p2512_p13)
}
  0x7a   : > { %s2516_s26 = scalar_lea.vmem %s2869_s12, 1024  ;;  %s2642_s6 = smov [#allocation9]  }
  0x7b   : > { %p2517_p9 = scmp.ne.s32.totalorder %s2869_s12, %s2516_s26  ;;  %s2521_s9 = sshll.u32 %s2642_s6, 4  ;;  %s2522_s9 = int_to_ptr.vmem [resolvable:$false] %s2521_s9 }
  0x7c   : > { %s2523_s17 = scalar_lea.vmem %s2522_s9, 2048  ;;  %p2524_p11 = scmp.lt.s32.totalorder %s2869_s12, %s2522_s9 }
  0x7d   : > { %p2519_p3 = pnand %p2517_p9, %p3209_p12  ;;  %p2525_p8 = scmp.lt.s32.totalorder %s2523_s17, %s2516_s26 }
  0x7f   : > { %p2520_p4 = pneg %p2519_p3  ;;  %p2526_p6 = por %p2525_p8, %p2524_p11 }
  0x81   : > { %p2527_p7 = pnand %p2526_p6, %p2520_p4 }
  0x83   : > { %2530 = shalt.err (!%p2527_p7)
}
  0x84   : > { %s2643_s27 = smov 64   ;;  %s2644_s14 = smov 4  }
  0x85   : > { %p3210_p5 = scmp.ne.s32.totalorder %s3200_s16, 0  ;;  %s2531_s29 = scalar_lea.hbm %s2829_s13, 2048 }
  0x86   : > { %p2532_p2 = scmp.ne.s32.totalorder %s2829_s13, %s2531_s29  ;;  %s2536_s18 = scalar_lea.hbm %s3181_s7, 4096 }
  0x87   : > { %2237 = dma.hbm_to_vmem [thread:$0]  (!%p3210_p5), %s2867_s10, 1024, %s2869_s12, %s2752_s23, %s2643_s27, %s2643_s27, %s2644_s14  }
  0x88   : > { %p2534_p10 = pnand %p2532_p2, %p3209_p12  ;;  %p2537_p1 = scmp.lt.u32.totalorder %s2829_s13, %s3181_s7 }
  0x89   : > { %p2538_p13 = scmp.lt.u32.totalorder %s2536_s18, %s2531_s29  ;;  %p2540_p3 = scmp.lt.u32.totalorder %s2531_s29, %s2829_s13 }
  0x8a   : > { %p2535_p0 = pneg %p2534_p10 }
  0x8b   : > { %p2539_p9 = por %p2538_p13, %p2537_p1 }
  0x8d   : > { %p2541_p4 = por %p2540_p3, %p2539_p9 }
  0x8f   : > { %p2542_p11 = pnand %p2541_p4, %p2535_p0 }
  0x91   : > { %2545 = shalt.err (!%p2542_p11)
}
  0x92   : > { %s2546_s12 = scalar_lea.vmem %s2833_s22, 2048  ;;  %s2645_s23 = smov [#allocation12]  }
  0x93   : > { %p2547_p8 = scmp.ne.s32.totalorder %s2833_s22, %s2546_s12  ;;  %s2551_s10 = sshll.u32 %s2645_s23, 4  ;;  %s2552_s10 = int_to_ptr.vmem [resolvable:$false] %s2551_s10 }
  0x94   : > { %s2553_s26 = scalar_lea.vmem %s2552_s10, 4096  ;;  %p2554_p2 = scmp.lt.s32.totalorder %s2833_s22, %s2552_s10 }
  0x95   : > { %p2549_p6 = pnand %p2547_p8, %p3209_p12  ;;  %p2555_p10 = scmp.lt.s32.totalorder %s2553_s26, %s2546_s12 }
  0x97   : > { %p2550_p7 = pneg %p2549_p6  ;;  %p2556_p1 = por %p2555_p10, %p2554_p2 }
  0x99   : > { %p2557_p13 = pnand %p2556_p1, %p2550_p7 }
  0x9b   : > { %2560 = shalt.err (!%p2557_p13)
}
  0x9c   : > { %2243 = dma.hbm_to_vmem [thread:$0]  (!%p3210_p5), %s2829_s13, 2048, %s2833_s22, %s2797_s4, %s2643_s27, %s2643_s27, %s2644_s14  }
  0x9d   : > { %p3211_p12 = scmp.ne.s32.totalorder %s3205_s11, 0 }
  0x9e   : > { %p3212_p0 = scmp.eq.s32.totalorder (!%p3211_p12), %s2836_s24, 0 }
  0x9f   : > { %361 = sbr.rel (%p3211_p12) target bundleno = 3083 (0xc0b), region = 52 }
  0xa6   : > { %2604 = dma.done.wait (%p3212_p0), [#allocation5], 1024   ;;  %p3213_p9 = pmov %p3212_p0 }
  0xa7   : > { %s367_s16 = sand.u32 1, %s2836_s24   ;;  %s369_s25 = sand.u32 1, %s2625_s28  }
  0xa8   : > { %2606 = vsyncadd (%p3213_p9), [#allocation5], 4294966272  ;;  %s2210_s6 = smul.u32 192, %s369_s25  ;;  %s368_s9 = scalar_lea.sflag [#allocation8], %s367_s16 }
  0xa9   : > { %p3214_p3 = scmp.ne.s32.totalorder %s3204_s15, 0 }
  0xaa   : > { %s2948_s17 = scalar_lea.vmem [#allocation7], %s2210_s6 }
  0xab   : > { %2608 = dma.done.wait (%p3214_p3), %s368_s9, 4096  }
  0xac   : > { %2610 = vsyncadd (%p3214_p3), %s368_s9, 4294963200  ;;  %s1928_s4 = sshll.u32 %s369_s25, 6  ;;  %s1929_s13 = sshll.u32 %s369_s25, 7 }
  0xad   : > { %s2954_s22 = scalar_lea.vmem [#allocation9], %s1928_s4  ;;  %s386_s11 = scalar_lea.sflag [#allocation11], %s367_s16 }
  0xae   : > { %s2956_s27 = scalar_lea.vmem [#allocation10], %s1929_s13 }
  0xaf   : > { %2612 = dma.done.wait (%p3214_p3), %s386_s11, 4096  }
  0xb0   : > { %2614 = vsyncadd (%p3214_p3), %s386_s11, 4294963200  ;;  %s2962_s14 = scalar_lea.vmem [#allocation12], %s1929_s13  ;;  %p3215_p5 = scmp.ne.s32.totalorder %s2836_s24, 0 }
  0xb1   : > { %v446_v0 = vld [vmem:[%s3174_s0] sm:$0xff] (!%p3215_p5)  ;;  %v462_v1 = vld [vmem:[#allocation4] sm:$0xff] (!%p3215_p5)  ;;  %v2646_v2 = vmov (!%p3215_p5), 0   ;;  %v463_v3 = vld [vmem:[#allocation4 + $0x8] sm:$0xff] (!%p3215_p5)  ;;  %v2647_v14 = vmov (!%p3215_p5), 0.0   ;;  %v448_v19 = vlaneseq (!%p3215_p5)  ;;  %vm472_vm2 = vcmask (!%p3215_p5), 523264  }
  0xb2   : > { %445 = sbr.rel (%p3215_p5) target bundleno = 529 (0x211), region = 76  ;;  %2297 = vset.pattern.permute.xlu0 (!%p3215_p5), %v2646_v2  ;;  %v464_v4 = vld [vmem:[#allocation4 + $0x10] sm:$0xff] (!%p3215_p5)  ;;  %v465_v5 = vld [vmem:[#allocation4 + $0x18] sm:$0xff] (!%p3215_p5)  ;;  %2298 = vset.pattern.permute.xlu1 (!%p3215_p5), %v2646_v2  ;;  %v2192_v6 = vpack.c.bf16 (!%p3215_p5), %v463_v3, %v462_v1  ;;  %v466_v9 = vld [vmem:[#allocation4 + $0x20] sm:$0xff] (!%p3215_p5)  ;;  %vm556_vm0 = vcmp.eq.s32.totalorder (!%p3215_p5), %v446_v0, 0  ;;  %vm588_vm6 = vcmask (!%p3215_p5), 64512  }
  0xb3   : > { %451 = vperm.xlu0 (!%p3215_p5), %2297, %v446_v0   ;;  %v2196_v7 = vpack.c.bf16 (!%p3215_p5), %v465_v5, %v464_v4  ;;  %v447_v8 = vld [vmem:[%s3174_s0 + $0x8] sm:$0xff] (!%p3215_p5)  ;;  %v467_v10 = vld [vmem:[#allocation4 + $0x28] sm:$0xff] (!%p3215_p5)  ;;  %v468_v12 = vld [vmem:[#allocation4 + $0x30] sm:$0xff] (!%p3215_p5)  ;;  %v1936_v15 = vsel (!%p3215_p5), %vm556_vm0, 1.0, %v2647_v14  ;;  %v449_v20 = vand.u32 (!%p3215_p5), 127, %v448_v19  ;;  %v572_v22 = vshrl.u32 (!%p3215_p5), %v448_v19, 7 }
  0xb4   : > { %2193 = vmatprep.subr.bf16.mxu0 (!%p3215_p5), %v2192_v6  ;;  %vm557_vm1 = vcmp.eq.s32.totalorder (!%p3215_p5), %v447_v8, 0  ;;  %v2200_v11 = vpack.c.bf16 (!%p3215_p5), %v467_v10, %v466_v9  ;;  %v469_v13 = vld [vmem:[#allocation4 + $0x38] sm:$0xff] (!%p3215_p5)  ;;  %v562_v21 = vld [vmem:[%s3175_s1] sm:$0x3] (!%p3215_p5) }
  0xb5   : > { %2195 = vmatpush3.bf16.msra.mxu0 (!%p3215_p5), %v2192_v6  ;;  %v1937_v16 = vsel (!%p3215_p5), %vm557_vm1, 1.0, %v2647_v14  ;;  %v2204_v18 = vpack.c.bf16 (!%p3215_p5), %v469_v13, %v468_v12  ;;  %vm563_vm4 = vcmp.eq.s32.totalorder (!%p3215_p5), %v562_v21, 0  ;;  %v573_v26 = vsub.s32 (!%p3215_p5), 0, %v572_v22  ;;  %v471_v39 = vld [vmem:[%s3177_s3 + $0x8] sm:$0xff] (!%p3215_p5)  ;;  %v470_v40 = vld [vmem:[%s3177_s3] sm:$0xff] (!%p3215_p5) }
  0xb6   : > { %2197 = vmatprep.subr.bf16.mxu0 (!%p3215_p5), %v2196_v7  ;;  %v2299_v17 = vpack.i.bf16 (!%p3215_p5), %v1937_v16, %v1936_v15  ;;  %v584_v27 = vsub.s32 (!%p3215_p5), 1, %v572_v22  ;;  %v1938_v28 = vsel (!%p3215_p5), %vm563_vm4, 1.0, %v2647_v14 }
  0xb7   : > { %454 = vperm.xlu0 (!%p3215_p5), %2297, %v447_v8   ;;  %v574_v30 = vrot.slane (!%p3215_p5), %v1938_v28, %v573_v26 }
  0xb8   : > { %2300 = vperm.xlu1 (!%p3215_p5), %2298, %v2299_v17   ;;  %v585_v31 = vrot.slane (!%p3215_p5), %v1938_v28, %v584_v27 }
  0xb9   : > { %2199 = vmatpush3.bf16.msra.mxu0 %v2196_v7 }
  0xba   : > { %2201 = vmatprep.subr.bf16.mxu0 %v2200_v11 }
  0xbd   : > { %2203 = vmatpush3.bf16.msra.mxu0 %v2200_v11 }
  0xbe   : > { %2205 = vmatprep.subr.bf16.mxu0 %v2204_v18 }
  0xc1   : > { %2207 = vmatpush3.bf16.msra.mxu0 %v2204_v18 }
 0x132   : > { %v452_v23 = vpop.permute.xlu0 %451 }
 0x133   : > { %vm456_vm3 = vcmp.eq.s32.totalorder %v449_v20, %v452_v23 }
 0x134   : > { %v1932_v24 = vsel %vm456_vm3, 1.0, %v2647_v14 }
 0x135   : > { %2101 = vmatprep.mubr.msk.f32.mxu0 %vm472_vm2, %v1932_v24 }
 0x136   : > { %v455_v25 = vpop.permute.xlu0 %454 }
 0x137   : > { %vm457_vm5 = vcmp.eq.s32.totalorder %v449_v20, %v455_v25  ;;  %v2301_v32 = vpop.permute.xlu1 %2300 }
 0x138   : > { %v1933_v29 = vsel %vm457_vm5, 1.0, %v2647_v14  ;;  %v2303_v33 = vunpack.i.h.bf16 %v2301_v32  ;;  %v2302_v34 = vunpack.i.l.bf16 %v2301_v32 }
 0x139   : > { %2102 = vmatmul.mubr.msk.f32.vlgmr.msra.gmra.mrb[0].mxu0 %vm472_vm2, %v1933_v29 }
 0x13a   : > { %v586_v35 = vmax.f32 %v2303_v33, %v585_v31  ;;  %v575_v36 = vmax.f32 %v2302_v34, %v574_v30 }
 0x13c   : > { %v587_v37 = vmul.f32 -1e+09, %v586_v35  ;;  %v576_v38 = vmul.f32 -1e+09, %v575_v36 }
 0x13e   : > { %591 = vst.msk [vmem:[#allocation3 + $0x10] sm:$0xff] %vm588_vm6, %v587_v37  ;;  %592 = vst.msk [vmem:[#allocation3 + $0x18] sm:$0xff] %vm588_vm6, %v587_v37 }
 0x13f   : > { %589 = vst.msk [vmem:[#allocation3] sm:$0xff] %vm588_vm6, %v576_v38  ;;  %590 = vst.msk [vmem:[#allocation3 + $0x8] sm:$0xff] %vm588_vm6, %v576_v38 }
 0x20c   : > { %v2103_v41 = vpop.f32.mrb[0].mxu0 }
 0x20d   : > { %v551_v42 = vadd.f32 %v2103_v41, %v471_v39  ;;  %v545_v43 = vpop.f32.mrb[1].mxu0 }
 0x20e   : > { %v546_v44 = vadd.f32 %v545_v43, %v470_v40 }
 0x20f   : > { %555 = vst [vmem:[#allocation2 + $0x8] sm:$0xff] %v551_v42 }
 0x210   : > { %554 = vst [vmem:[#allocation2] sm:$0xff] %v546_v44 }
 0x211 PF: > { %v2309_v45 = vld [vmem:[%s2948_s17 + $0x4] ss:$12 sps:$4 sm:$0xff]   ;;  %v2311_v46 = vld [vmem:[%s2948_s17] ss:$12 sps:$4 sm:$0xff]   ;;  %v2648_v47 = vmov 0   ;;  %v2649_v48 = vmov 0.0  }
 0x212   : > { %788 = vmatprep.mubr.bf16.mxu0 %v2648_v47  ;;  %2104 = vmatprep.subr.bf16.mxu1 %v2649_v48  ;;  %v2312_v49 = vld [vmem:[%s2948_s17 + $0x1c] ss:$12 sps:$4 sm:$0xff]   ;;  %v2314_v50 = vld [vmem:[%s2948_s17 + $0x18] ss:$12 sps:$4 sm:$0xff]   ;;  %v2315_v51 = vld [vmem:[%s2948_s17 + $0x34] ss:$12 sps:$4 sm:$0xff]  }
 0x213   : > { %756 = vmatprep.subr.bf16.mxu0 %v2309_v45  ;;  %v2317_v52 = vld [vmem:[%s2948_s17 + $0x30] ss:$12 sps:$4 sm:$0xff]   ;;  %v2318_v53 = vld [vmem:[%s2948_s17 + $0x4c] ss:$12 sps:$4 sm:$0xff]   ;;  %v2320_v54 = vld [vmem:[%s2948_s17 + $0x48] ss:$12 sps:$4 sm:$0xff]  }
 0x214   : > { %757 = vmatpush1.bf16.msra.mxu0 %v2311_v46  ;;  %v2321_v55 = vld [vmem:[%s2948_s17 + $0x64] ss:$12 sps:$4 sm:$0xff]   ;;  %v2333_v56 = vld [vmem:[%s2948_s17 + $0x8] ss:$12 sps:$4 sm:$0xff]   ;;  %v2334_v57 = vld [vmem:[%s2948_s17 + $0x20] ss:$12 sps:$4 sm:$0xff]  }
 0x215   : > { %758 = vmatprep.subr.bf16.mxu0 %v2312_v49  ;;  %2105 = vmatpush3.bf16.msra.mxu1 %v2333_v56  ;;  %v2323_v58 = vld [vmem:[%s2948_s17 + $0x60] ss:$12 sps:$4 sm:$0xff]   ;;  %v2324_v59 = vld [vmem:[%s2948_s17 + $0x7c] ss:$12 sps:$4 sm:$0xff]   ;;  %v2326_v60 = vld [vmem:[%s2948_s17 + $0x78] ss:$12 sps:$4 sm:$0xff]  }
 0x216   : > { %2106 = vmatprep.subr.bf16.mxu1 %v2649_v48  ;;  %v2335_v61 = vld [vmem:[%s2948_s17 + $0x38] ss:$12 sps:$4 sm:$0xff]   ;;  %v2327_v62 = vld [vmem:[%s2948_s17 + $0x94] ss:$12 sps:$4 sm:$0xff]   ;;  %v2336_v63 = vld [vmem:[%s2948_s17 + $0x50] ss:$12 sps:$4 sm:$0xff]  }
 0x217   : > { %v2329_v0 = vld [vmem:[%s2948_s17 + $0x90] ss:$12 sps:$4 sm:$0xff]   ;;  %v2330_v1 = vld [vmem:[%s2948_s17 + $0xac] ss:$12 sps:$4 sm:$0xff]   ;;  %v2337_v2 = vld [vmem:[%s2948_s17 + $0x68] ss:$12 sps:$4 sm:$0xff]  }
 0x218   : > { %759 = vmatpush1.bf16.msra.mxu0 %v2314_v50  ;;  %v2332_v3 = vld [vmem:[%s2948_s17 + $0xa8] ss:$12 sps:$4 sm:$0xff]   ;;  %v3009_v5 = vld [vmem:[#allocation2 + $0x8] sm:$0xff]  ;;  %v2338_v6 = vld [vmem:[%s2948_s17 + $0x80] ss:$12 sps:$4 sm:$0xff]   ;;  %vm2650_vm7 = vmmov 0  }
 0x219   : > { %760 = vmatprep.subr.bf16.mxu0 %v2315_v51  ;;  %2107 = vmatpush3.bf16.msra.mxu1 %v2334_v57  ;;  %v3007_v4 = vld [vmem:[#allocation2] sm:$0xff]  ;;  %v2339_v8 = vld [vmem:[%s2948_s17 + $0x98] ss:$12 sps:$4 sm:$0xff]   ;;  %vm843_vm8 = vcmask 523264   ;;  %s2651_s26 = smov 64   ;;  %vm1098_vm9 = vcmask 1043456  }
 0x21a   : > { %2108 = vmatprep.subr.bf16.mxu1 %v2649_v48  ;;  %v595_v7 = vpack.c.bf16 %v3009_v5, %v3007_v4  ;;  %v2340_v9 = vld [vmem:[%s2948_s17 + $0xb0] ss:$12 sps:$4 sm:$0xff]   ;;  %2120 = vmatprep.mubr.msk.bf16.mxu1 %vm2650_vm7, %v2649_v48  ;;  %v1040_v32 = vld [vmem:[#allocation3] sm:$0xff]  ;;  %vm1048_vm10 = vcmask 64512   ;;  %v1041_v39 = vld [vmem:[#allocation3 + $0x8] sm:$0xff]  ;;  %p2011_p4 = scmp.ne.s32.totalorder %s2836_s24, 1 }
 0x21b   : > { %v1042_v46 = vld [vmem:[#allocation3 + $0x10] sm:$0xff] }
 0x21c   : > { %761 = vmatpush1.bf16.msra.mxu0 %v2317_v52 }
 0x21d   : > { %762 = vmatprep.subr.bf16.mxu0 %v2318_v53  ;;  %2109 = vmatpush3.bf16.msra.mxu1 %v2335_v61 }
 0x21e   : > { %2110 = vmatprep.subr.bf16.mxu1 %v2649_v48 }
 0x220   : > { %763 = vmatpush1.bf16.msra.mxu0 %v2320_v54 }
 0x221   : > { %764 = vmatprep.subr.bf16.mxu0 %v2321_v55  ;;  %2111 = vmatpush3.bf16.msra.mxu1 %v2336_v63  ;;  %v1043_v55 = vld [vmem:[#allocation3 + $0x18] sm:$0xff] }
 0x222   : > { %2112 = vmatprep.subr.bf16.mxu1 %v2649_v48 }
 0x224   : > { %765 = vmatpush1.bf16.msra.mxu0 %v2323_v58 }
 0x225   : > { %766 = vmatprep.subr.bf16.mxu0 %v2324_v59  ;;  %2113 = vmatpush3.bf16.msra.mxu1 %v2337_v2 }
 0x226   : > { %2114 = vmatprep.subr.bf16.mxu1 %v2649_v48 }
 0x228   : > { %767 = vmatpush1.bf16.msra.mxu0 %v2326_v60 }
 0x229   : > { %768 = vmatprep.subr.bf16.mxu0 %v2327_v62  ;;  %2115 = vmatpush3.bf16.msra.mxu1 %v2338_v6 }
 0x22a   : > { %2116 = vmatprep.subr.bf16.mxu1 %v2649_v48 }
 0x22c   : > { %769 = vmatpush1.bf16.msra.mxu0 %v2329_v0 }
 0x22d   : > { %770 = vmatprep.subr.bf16.mxu0 %v2330_v1  ;;  %2117 = vmatpush3.bf16.msra.mxu1 %v2339_v8 }
 0x22e   : > { %2118 = vmatprep.subr.bf16.mxu1 %v2649_v48 }
 0x230   : > { %771 = vmatpush1.bf16.msra.mxu0 %v2332_v3 }
 0x231   : > { %2148 = vmatprep.subr.bf16.mxu0 %v2649_v48  ;;  %2119 = vmatpush3.bf16.msra.mxu1 %v2340_v9 }
 0x232   : > { %2124 = vmatprep.subr.bf16.mxu1 %v2649_v48 }
 0x233   : > { %789 = vmatmul.mubr.bf16.vlgmr.msra.gmra.mrb[0].mxu0 %v595_v7 }
 0x234   : > { %2150 = vmatprep.mubr.msk.bf16.mxu0 %vm2650_vm7, %v2649_v48  ;;  %2121 = vmatmul.mubr.bf16.vlgmr.msra.gmra.mrb[0].mxu1 %v595_v7 }
 0x235   : > { %2126 = vmatprep.mubr.msk.bf16.mxu1 %vm2650_vm7, %v2649_v48 }
 0x306   : > { %v790_v10 = vpop.f32.mrb[0].mxu0 }
 0x307   : > { %v792_v11 = vpop.f32.mrb[1].mxu0  ;;  %v833_v19 = vpop.f32.mrb[0].mxu1 }
 0x308   : > { %v794_v12 = vpop.f32.mrb[2].mxu0  ;;  %v2122_v20 = vpop.f32.mrb[1].mxu1 }
 0x309   : > { %v840_v13 = vpack.c.bf16 %v794_v12, %v790_v10  ;;  %v796_v14 = vpop.f32.mrb[3].mxu0  ;;  %v836_v21 = vpop.f32.mrb[2].mxu1 }
 0x30a   : > { %v841_v15 = vpack.c.bf16 %v796_v14, %v792_v11  ;;  %v3037_v22 = vpack.c.bf16 %v836_v21, %v833_v19  ;;  %v2123_v23 = vpop.f32.mrb[3].mxu1 }
 0x30b   : > { %v942_v18 = vrot.slane %v840_v13, 4 }
 0x30c   : > { %894 = vrot.lane.b32.xlu0 %v841_v15, %s2651_s26  ;;  %v848_v16 = vsel %vm843_vm8, %v841_v15, 0  ;;  %v943_v17 = vrot.slane %v841_v15, 4  ;;  %v1100_v24 = vsel %vm1098_vm9, %v3037_v22, 0  ;;  %v1198_v20 = vrot.slane %v3037_v22, 4 }
 0x30d   : > { %2125 = vmatpush3.bf16.xpose.msra.mxu1 %v848_v16  ;;  %2149 = vmatpush3.bf16.msra.mxu0 %v1100_v24 }
 0x30e   : > { %992 = vrot.lane.b32.xlu1 %v943_v17, %s2651_s26  ;;  %2130 = vmatprep.subr.bf16.mxu1 %v2649_v48  ;;  %v948_v28 = vsel %vm843_vm8, %v943_v17, 0 }
 0x30f   : > { %2160 = vmatprep.subr.bf16.mxu0 %v2649_v48 }
 0x310   : > { %891 = vrot.lane.b32.xlu0 %v840_v13, %s2651_s26 }
 0x312   : > { %990 = vrot.lane.b32.xlu1 %v942_v18, %s2651_s26 }
 0x314   : > { %2127 = vmatmul.mubr.msk.bf16.vlgmr.msra.gmra.mrb[4].mxu1 %vm843_vm8, %v840_v13 }
 0x315   : > { %2132 = vmatprep.mubr.msk.bf16.mxu1 %vm2650_vm7, %v2649_v48 }
 0x37e   : > { %v895_v25 = vpop.permute.xlu0 %894 }
 0x37f   : > { %v900_v26 = vsel %vm843_vm8, %v895_v25, 0 }
 0x380   : > { %2131 = vmatpush3.bf16.xpose.msra.mxu1 %v900_v26  ;;  %v993_v29 = vpop.permute.xlu1 %992 }
 0x381   : > { %2136 = vmatprep.subr.bf16.mxu1 %v2649_v48  ;;  %v998_v30 = vsel %vm843_vm8, %v993_v29, 0 }
 0x382   : > { %v892_v27 = vpop.permute.xlu0 %891 }
 0x384   : > { %v991_v31 = vpop.permute.xlu1 %990 }
 0x387   : > { %2133 = vmatmul.mubr.msk.bf16.vlgmr.msra.gmra.mrb[8].mxu1 %vm843_vm8, %v892_v27 }
 0x388   : > { %2137 = vmatpush3.bf16.xpose.msra.mxu1 %v948_v28  ;;  %2138 = vmatprep.mubr.msk.bf16.mxu1 %vm2650_vm7, %v2649_v48 }
 0x389   : > { %2142 = vmatprep.subr.bf16.mxu1 %v2649_v48 }
 0x38f   : > { %2139 = vmatmul.mubr.msk.bf16.vlgmr.msra.gmra.mrb[12].mxu1 %vm843_vm8, %v942_v18 }
 0x390   : > { %2143 = vmatpush3.bf16.xpose.msra.mxu1 %v998_v30  ;;  %2144 = vmatprep.mubr.msk.bf16.mxu1 %vm2650_vm7, %v2649_v48 }
 0x391   : > { %2154 = vmatprep.subr.bf16.mxu1 %v2649_v48 }
 0x397   : > { %2145 = vmatmul.mubr.msk.bf16.vlgmr.msra.gmra.mrb[16].mxu1 %vm843_vm8, %v991_v31 }
 0x398   : > { %2156 = vmatprep.mubr.msk.bf16.mxu1 %vm2650_vm7, %v2649_v48 }
 0x3e7   : > { %v884_v33 = vpop.f32.mrb[4].mxu1 }
 0x3e8   : > { %v1044_v34 = vadd.f32 %v1040_v32, %v884_v33  ;;  %v2128_v35 = vpop.f32.mrb[5].mxu1 }
 0x3e9   : > { %v887_v36 = vpop.f32.mrb[6].mxu1 }
 0x3ea   : > { %v2129_v37 = vpop.f32.mrb[7].mxu1  ;;  %v1049_v38 = vsel %vm1048_vm10, %v1044_v34, -inf }
 0x3eb   : > { %1050 = vmax.xlane.f32.xlu0 %v1049_v38 }
 0x45a   : > { %v936_v40 = vpop.f32.mrb[8].mxu1 }
 0x45b   : > { %v1045_v41 = vadd.f32 %v1041_v39, %v936_v40  ;;  %v2134_v42 = vpop.f32.mrb[9].mxu1 }
 0x45c   : > { %v939_v43 = vpop.f32.mrb[10].mxu1  ;;  %v2341_v42 = vld [vmem:[%s2954_s22] sm:$0xff]  }
 0x45d   : > { %v2135_v44 = vpop.f32.mrb[11].mxu1  ;;  %v1052_v45 = vsel %vm1048_vm10, %v1045_v41, -inf  ;;  %v2342_v43 = vld [vmem:[%s2954_s22 + $0x8] sm:$0xff]  }
 0x45e   : > { %1053 = vmax.xlane.f32.xlu1 %v1052_v45  ;;  %v2343_v44 = vld [vmem:[%s2954_s22 + $0x10] sm:$0xff]   ;;  %v2344_v45 = vld [vmem:[%s2954_s22 + $0x18] sm:$0xff]  }
 0x462   : > { %v984_v49 = vpop.f32.mrb[12].mxu1 }
 0x463   : > { %v1046_v50 = vadd.f32 %v1042_v46, %v984_v49  ;;  %v2140_v51 = vpop.f32.mrb[13].mxu1  ;;  %v2345_v46 = vld [vmem:[%s2954_s22 + $0x20] sm:$0xff]   ;;  %v2347_v49 = vld [vmem:[%s2954_s22 + $0x30] sm:$0xff]  }
 0x464   : > { %v987_v52 = vpop.f32.mrb[14].mxu1 }
 0x465   : > { %v2141_v53 = vpop.f32.mrb[15].mxu1  ;;  %v1055_v54 = vsel %vm1048_vm10, %v1046_v50, -inf }
 0x466   : > { %1056 = vmax.xlane.f32.xlu0 %v1055_v54 }
 0x46a   : > { %v1034_v56 = vpop.f32.mrb[16].mxu1 }
 0x46b   : > { %v1047_v57 = vadd.f32 %v1043_v55, %v1034_v56  ;;  %v2146_v58 = vpop.f32.mrb[17].mxu1 }
 0x46c   : > { %v1037_v59 = vpop.f32.mrb[18].mxu1  ;;  %v2348_v58 = vld [vmem:[%s2954_s22 + $0x38] sm:$0xff]  }
 0x46d   : > { %v2147_v60 = vpop.f32.mrb[19].mxu1  ;;  %v1058_v61 = vsel %vm1048_vm10, %v1047_v57, -inf }
 0x46e   : > { %1059 = vmax.xlane.f32.xlu0 %v1058_v61 }
 0x478   : > { %v1051_v62 = vpop.xlane.xlu0 %1050 }
 0x479   : > { %v1061_v63 = vsub.f32 %v1044_v34, %v1051_v62 }
 0x47b   : > { %v1065_v0 = vmul.f32 1.442695, %v1061_v63 }
 0x47d   : > { %2389 = vpow2.f32 %v1065_v0 }
 0x487   : > { %v2390_v1 = vpop.eup %2389 }
 0x488   : > { %v1073_v2 = vsel %vm1048_vm10, %v2390_v1, 0.0 }
 0x489   : > { %1074 = vadd.xlane.f32.xlu1 %v1073_v2 }
 0x4eb   : > { %v1054_v3 = vpop.xlane.xlu1 %1053 }
 0x4ec   : > { %v1062_v6 = vsub.f32 %v1045_v41, %v1054_v3 }
 0x4ee   : > { %v1067_v7 = vmul.f32 1.442695, %v1062_v6 }
 0x4f0   : > { %2391 = vpow2.f32 %v1067_v7 }
 0x4f3   : > { %v1057_v8 = vpop.xlane.xlu0 %1056 }
 0x4f4   : > { %v1063_v9 = vsub.f32 %v1046_v50, %v1057_v8 }
 0x4f6   : > { %v1069_v10 = vmul.f32 1.442695, %v1063_v9 }
 0x4f8   : > { %2393 = vpow2.f32 %v1069_v10 }
 0x4fa   : > { %v2392_v11 = vpop.eup %2391 }
 0x4fb   : > { %v1060_v12 = vpop.xlane.xlu0 %1059  ;;  %v1076_v13 = vsel %vm1048_vm10, %v2392_v11, 0.0 }
 0x4fc   : > { %v1064_v14 = vsub.f32 %v1047_v57, %v1060_v12  ;;  %1077 = vadd.xlane.f32.xlu0 %v1076_v13 }
 0x4fe   : > { %v1071_v15 = vmul.f32 1.442695, %v1064_v14 }
 0x500   : > { %2395 = vpow2.f32 %v1071_v15 }
 0x502   : > { %v2394_v16 = vpop.eup %2393 }
 0x503   : > { %v1079_v17 = vsel %vm1048_vm10, %v2394_v16, 0.0 }
 0x504   : > { %1080 = vadd.xlane.f32.xlu1 %v1079_v17  ;;  %v2349_v17 = vld [vmem:[%s2956_s27] ss:$8 sps:$4 sm:$0xff]  }
 0x50a   : > { %v2396_v18 = vpop.eup %2395 }
 0x50b   : > { %v1082_v19 = vsel %vm1048_vm10, %v2396_v18, 0.0 }
 0x50c   : > { %1083 = vadd.xlane.f32.xlu0 %v1082_v19  ;;  %v2354_v19 = vld [vmem:[%s2956_s27 + $0x14] ss:$8 sps:$4 sm:$0xff]  }
 0x515   : > { %1145 = vrot.lane.b32.xlu1 %v3037_v22, %s2651_s26  ;;  %v1203_v22 = vsel %vm1098_vm9, %v1198_v20, 0 }
 0x516   : > { %v1075_v21 = vpop.xlane.xlu1 %1074 }
 0x517   : > { %2397 = vrcp.f32 %v1075_v21  ;;  %v2357_v21 = vld [vmem:[%s2956_s27 + $0x24] ss:$8 sps:$4 sm:$0xff]  }
 0x521   : > { %v2398_v25 = vpop.eup %2397 }
 0x522   : > { %1247 = vrot.lane.b32.xlu0 %v1198_v20, %s2651_s26  ;;  %v1089_v27 = vmul.f32 %v2398_v25, %v2390_v1  ;;  %v2352_v20 = vld [vmem:[%s2956_s27 + $0x10] ss:$8 sps:$4 sm:$0xff]  }
 0x589   : > { %v1078_v23 = vpop.xlane.xlu0 %1077 }
 0x58a   : > { %2399 = vrcp.f32 %v1078_v23 }
 0x591   : > { %v1081_v24 = vpop.xlane.xlu1 %1080 }
 0x592   : > { %2401 = vrcp.f32 %v1081_v24 }
 0x594   : > { %v2400_v26 = vpop.eup %2399 }
 0x595   : > { %v1090_v28 = vmul.f32 %v2400_v26, %v2392_v11  ;;  %v1146_v29 = vpop.permute.xlu1 %1145 }
 0x596   : > { %v1151_v30 = vsel %vm1098_vm9, %v1146_v29, 0 }
 0x597   : > { %2155 = vmatpush3.bf16.msra.mxu1 %v1151_v30  ;;  %v1093_v31 = vpack.c.bf16 %v1090_v28, %v1089_v27  ;;  %v2360_v30 = vld [vmem:[%s2956_s27 + $0x34] ss:$8 sps:$4 sm:$0xff]  }
 0x598   : > { %2166 = vmatprep.subr.bf16.mxu1 %v2649_v48 }
 0x599   : > { %2151 = vmatmul.mubr.msk.bf16.vlgmr.msra.gmra.mrb[4].mxu0 %vm1048_vm10, %v1093_v31  ;;  %v1084_v32 = vpop.xlane.xlu0 %1083  ;;  %v1143_v33 = vrot.slane %v1093_v31, 4  ;;  %v2358_v31 = vld [vmem:[%s2956_s27 + $0x30] ss:$8 sps:$4 sm:$0xff]  }
 0x59a   : > { %2161 = vmatpush3.bf16.msra.mxu0 %v1203_v22  ;;  %2403 = vrcp.f32 %v1084_v32  ;;  %2162 = vmatprep.mubr.msk.bf16.mxu0 %vm2650_vm7, %v2649_v48  ;;  %v2363_v22 = vld [vmem:[%s2956_s27 + $0x44] ss:$8 sps:$4 sm:$0xff]   ;;  %v2361_v32 = vld [vmem:[%s2956_s27 + $0x40] ss:$8 sps:$4 sm:$0xff]  }
 0x59b   : > { %2157 = vmatmul.mubr.msk.bf16.vlgmr.msra.gmra.mrb[20].mxu1 %vm1048_vm10, %v1143_v33  ;;  %2172 = vmatprep.subr.bf16.mxu0 %v2649_v48  ;;  %v2366_v33 = vld [vmem:[%s2956_s27 + $0x54] ss:$8 sps:$4 sm:$0xff]  }
 0x59c   : > { %2168 = vmatprep.mubr.msk.bf16.mxu1 %vm2650_vm7, %v2649_v48  ;;  %v2402_v36 = vpop.eup %2401 }
 0x59d   : > { %v1248_v34 = vpop.permute.xlu0 %1247  ;;  %v1091_v38 = vmul.f32 %v2402_v36, %v2394_v16  ;;  %v2367_v36 = vld [vmem:[%s2956_s27 + $0x60] ss:$8 sps:$4 sm:$0xff]  }
 0x59e   : > { %v1253_v35 = vsel %vm1098_vm9, %v1248_v34, 0  ;;  %v2364_v34 = vld [vmem:[%s2956_s27 + $0x50] ss:$8 sps:$4 sm:$0xff]  }
 0x59f   : > { %2167 = vmatpush3.bf16.msra.mxu1 %v1253_v35  ;;  %v2369_v35 = vld [vmem:[%s2956_s27 + $0x64] ss:$8 sps:$4 sm:$0xff]  }
 0x5a4   : > { %v2404_v37 = vpop.eup %2403 }
 0x5a5   : > { %v1092_v39 = vmul.f32 %v2404_v37, %v2396_v18  ;;  %v2351_v18 = vld [vmem:[%s2956_s27 + $0x4] ss:$8 sps:$4 sm:$0xff]   ;;  %v2372_v37 = vld [vmem:[%s2956_s27 + $0x74] ss:$8 sps:$4 sm:$0xff]  }
 0x5a6   : > { %1528 = vmatprep.subr.bf16.mxu1 %v2351_v18 }
 0x5a7   : > { %v1094_v40 = vpack.c.bf16 %v1092_v39, %v1091_v38  ;;  %v2370_v38 = vld [vmem:[%s2956_s27 + $0x70] ss:$8 sps:$4 sm:$0xff]   ;;  %v2373_v39 = vld [vmem:[%s2962_s14 + $0x40] sm:$0xff]  }
 0x5a9   : > { %2163 = vmatmul.mubr.msk.bf16.vlgmr.msra.gmra.mrb[8].mxu0 %vm1048_vm10, %v1094_v40  ;;  %v1246_v41 = vrot.slane %v1094_v40, 4  ;;  %v2374_v40 = vld [vmem:[%s2962_s14] sm:$0xff]  }
 0x5aa   : > { %2188 = vmatprep.mubr.msk.bf16.mxu0 %vm2650_vm7, %v2649_v48  ;;  %2173 = vmatpush3.bf16.msra.mxu0 %v2341_v42  ;;  %v2376_v42 = vld [vmem:[%s2962_s14 + $0x8] sm:$0xff]  }
 0x5ab   : > { %2169 = vmatmul.mubr.msk.bf16.vlgmr.msra.gmra.mrb[24].mxu1 %vm1048_vm10, %v1246_v41  ;;  %2174 = vmatprep.subr.bf16.mxu0 %v2649_v48  ;;  %v2375_v41 = vld [vmem:[%s2962_s14 + $0x48] sm:$0xff]  }
 0x5ac   : > { %1560 = vmatprep.mubr.bf16.mxu1 %v2648_v47  ;;  %v2346_v47 = vld [vmem:[%s2954_s22 + $0x28] sm:$0xff]   ;;  %1529 = vmatpush1.bf16.msra.mxu1 %v2349_v17 }
 0x5ad   : > { %1530 = vmatprep.subr.bf16.mxu1 %v2354_v19 }
 0x5ae   : > { %2175 = vmatpush3.bf16.msra.mxu0 %v2342_v43  ;;  %v2377_v43 = vld [vmem:[%s2962_s14 + $0x50] sm:$0xff]  }
 0x5af   : > { %2176 = vmatprep.subr.bf16.mxu0 %v2649_v48 }
 0x5b0   : > { %1531 = vmatpush1.bf16.msra.mxu1 %v2352_v20 }
 0x5b1   : > { %1532 = vmatprep.subr.bf16.mxu1 %v2357_v21 }
 0x5b2   : > { %2177 = vmatpush3.bf16.msra.mxu0 %v2343_v44  ;;  %v2378_v44 = vld [vmem:[%s2962_s14 + $0x10] sm:$0xff]  }
 0x5b3   : > { %2178 = vmatprep.subr.bf16.mxu0 %v2649_v48 }
 0x5b6   : > { %2179 = vmatpush3.bf16.msra.mxu0 %v2344_v45  ;;  %v2379_v45 = vld [vmem:[%s2962_s14 + $0x58] sm:$0xff]  }
 0x5b7   : > { %2180 = vmatprep.subr.bf16.mxu0 %v2649_v48 }
 0x5ba   : > { %2181 = vmatpush3.bf16.msra.mxu0 %v2345_v46  ;;  %v2380_v46 = vld [vmem:[%s2962_s14 + $0x18] sm:$0xff]  }
 0x5bb   : > { %2182 = vmatprep.subr.bf16.mxu0 %v2649_v48 }
 0x5be   : > { %2183 = vmatpush3.bf16.msra.mxu0 %v2346_v47  ;;  %v2381_v47 = vld [vmem:[%s2962_s14 + $0x60] sm:$0xff]  }
 0x5bf   : > { %2184 = vmatprep.subr.bf16.mxu0 %v2649_v48 }
 0x5c2   : > { %2185 = vmatpush3.bf16.msra.mxu0 %v2347_v49  ;;  %v2382_v49 = vld [vmem:[%s2962_s14 + $0x20] sm:$0xff]  }
 0x5c3   : > { %2186 = vmatprep.subr.bf16.mxu0 %v2649_v48 }
 0x5c6   : > { %2187 = vmatpush3.bf16.msra.mxu0 %v2348_v58 }
 0x5c7   : > { %2063 = vmatprep.subr.bf16.mxu0 %v2373_v39 }
 0x66c   : > { %v1136_v50 = vpop.f32.mrb[4].mxu0 }
 0x66d   : > { %v2152_v51 = vpop.f32.mrb[5].mxu0 }
 0x66e   : > { %v1139_v52 = vpop.f32.mrb[6].mxu0  ;;  %v1187_v53 = vpop.f32.mrb[20].mxu1  ;;  %v2384_v51 = vld [vmem:[%s2962_s14 + $0x28] sm:$0xff]  }
 0x66f   : > { %v2153_v54 = vpop.f32.mrb[7].mxu0  ;;  %v2158_v55 = vpop.f32.mrb[21].mxu1 }
 0x670   : > { %v1190_v56 = vpop.f32.mrb[22].mxu1 }
 0x671   : > { %v2159_v57 = vpop.f32.mrb[23].mxu1 }
 0x67c   : > { %v1239_v59 = vpop.f32.mrb[8].mxu0 }
 0x67d   : > { %v2164_v60 = vpop.f32.mrb[9].mxu0 }
 0x67e   : > { %v1242_v61 = vpop.f32.mrb[10].mxu0  ;;  %v1289_v62 = vpop.f32.mrb[24].mxu1 }
 0x67f   : > { %v2304_v63 = vpack.i.bf16 %v1289_v62, %v1187_v53  ;;  %v2165_v0 = vpop.f32.mrb[11].mxu0  ;;  %v2170_v1 = vpop.f32.mrb[25].mxu1 }
 0x680   : > { %v1292_v2 = vpop.f32.mrb[26].mxu1  ;;  %v2386_v0 = vld [vmem:[%s2962_s14 + $0x30] sm:$0xff]   ;;  %v2387_v1 = vld [vmem:[%s2962_s14 + $0x78] sm:$0xff]  }
 0x681   : > { %2305 = vrot.lane.b32.xlu1 %v2304_v63, %s2651_s26  ;;  %v2171_v48 = vpop.f32.mrb[27].mxu1  ;;  %v2385_v63 = vld [vmem:[%s2962_s14 + $0x70] sm:$0xff]   ;;  %v2388_v2 = vld [vmem:[%s2962_s14 + $0x38] sm:$0xff]  }
 0x6f3   : > { %v2306_v3 = vpop.permute.xlu1 %2305 }
 0x6f4   : > { %v2308_v6 = vunpack.i.h.bf16 %v2306_v3  ;;  %v2307_v7 = vunpack.i.l.bf16 %v2306_v3 }
 0x6f6   : > { %v1299_v8 = vsel %vm843_vm8, %v1239_v59, %v2308_v6  ;;  %v1197_v9 = vsel %vm843_vm8, %v1136_v50, %v2307_v7  ;;  %v2383_v50 = vld [vmem:[%s2962_s14 + $0x68] sm:$0xff]  }
 0x6f7   : > { %v1300_v10 = vpack.c.bf16 %v1299_v8, %v1197_v9 }
 0x6f9   : > { %2189 = vmatmul.mubr.bf16.vlgmr.msra.gmra.mrb[12].mxu0 %v1300_v10 }
 0x6fa   : > { %2064 = vmatpush3.bf16.msra.mxu0 %v2374_v40 }
 0x6fb   : > { %2065 = vmatprep.subr.bf16.mxu0 %v2375_v41 }
 0x6fe   : > { %2066 = vmatpush3.bf16.msra.mxu0 %v2376_v42 }
 0x6ff   : > { %2067 = vmatprep.subr.bf16.mxu0 %v2377_v43 }
 0x702   : > { %2068 = vmatpush3.bf16.msra.mxu0 %v2378_v44 }
 0x703   : > { %2069 = vmatprep.subr.bf16.mxu0 %v2379_v45 }
 0x706   : > { %2070 = vmatpush3.bf16.msra.mxu0 %v2380_v46 }
 0x707   : > { %2071 = vmatprep.subr.bf16.mxu0 %v2381_v47 }
 0x70a   : > { %2072 = vmatpush3.bf16.msra.mxu0 %v2382_v49 }
 0x70b   : > { %2073 = vmatprep.subr.bf16.mxu0 %v2383_v50 }
 0x70e   : > { %2074 = vmatpush3.bf16.msra.mxu0 %v2384_v51 }
 0x70f   : > { %2075 = vmatprep.subr.bf16.mxu0 %v2385_v63 }
 0x712   : > { %2076 = vmatpush3.bf16.msra.mxu0 %v2386_v0 }
 0x713   : > { %2077 = vmatprep.subr.bf16.mxu0 %v2387_v1 }
 0x716   : > { %2078 = vmatpush3.bf16.msra.mxu0 %v2388_v2 }
 0x7cc   : > { %v1399_v11 = vpop.f32.mrb[12].mxu0 }
 0x7cd   : > { %v1406_v12 = vadd.f32 %v1399_v11, %v3007_v4  ;;  %v2190_v13 = vpop.f32.mrb[13].mxu0  ;;  %v2355_v4 = vld [vmem:[%s2956_s27 + $0x20] ss:$8 sps:$4 sm:$0xff]  }
 0x7ce   : > { %v1402_v14 = vpop.f32.mrb[14].mxu0  ;;  %1533 = vmatpush1.bf16.msra.mxu1 %v2355_v4 }
 0x7cf   : > { %v1407_v15 = vadd.f32 %v1402_v14, %v3009_v5  ;;  %1408 = vadd.xlane.f32.xlu1 %v1406_v12  ;;  %v2191_v16 = vpop.f32.mrb[15].mxu0  ;;  %1534 = vmatprep.subr.bf16.mxu1 %v2360_v30 }
 0x7d1   : > { %1410 = vadd.xlane.f32.xlu0 %v1407_v15 }
 0x7d2   : > { %1535 = vmatpush1.bf16.msra.mxu1 %v2358_v31 }
 0x7d3   : > { %1536 = vmatprep.subr.bf16.mxu1 %v2363_v22 }
 0x7d6   : > { %1537 = vmatpush1.bf16.msra.mxu1 %v2361_v32 }
 0x7d7   : > { %1538 = vmatprep.subr.bf16.mxu1 %v2366_v33 }
 0x7da   : > { %1539 = vmatpush1.bf16.msra.mxu1 %v2364_v34 }
 0x7db   : > { %1540 = vmatprep.subr.bf16.mxu1 %v2369_v35 }
 0x7de   : > { %1541 = vmatpush1.bf16.msra.mxu1 %v2367_v36 }
 0x7df   : > { %1542 = vmatprep.subr.bf16.mxu1 %v2372_v37 }
 0x7e2   : > { %1543 = vmatpush1.bf16.msra.mxu1 %v2370_v38 }
 0x85c   : > { %v1409_v5 = vpop.xlane.xlu1 %1408 }
 0x85d   : > { %v1413_v23 = vmul.f32 0.0078125, %v1409_v5 }
 0x85e   : > { %v1411_v24 = vpop.xlane.xlu0 %1410 }
 0x85f   : > { %v1415_v25 = vsub.f32 %v1406_v12, %v1413_v23  ;;  %v1414_v26 = vmul.f32 0.0078125, %v1411_v24 }
 0x861   : > { %v1416_v27 = vsub.f32 %v1407_v15, %v1414_v26  ;;  %v1417_v28 = vmul.f32 %v1415_v25, %v1415_v25 }
 0x863   : > { %1419 = vadd.xlane.f32.xlu0 %v1417_v28  ;;  %v1418_v29 = vmul.f32 %v1416_v27, %v1416_v27 }
 0x865   : > { %1421 = vadd.xlane.f32.xlu1 %v1418_v29 }
 0x8f0   : > { %v1420_v52 = vpop.xlane.xlu0 %1419 }
 0x8f1   : > { %v1423_v53 = vmul.f32 0.0078125, %v1420_v52 }
 0x8f2   : > { %v1422_v54 = vpop.xlane.xlu1 %1421 }
 0x8f3   : > { %v1425_v55 = vadd.f32 1e-05, %v1423_v53  ;;  %v1424_v56 = vmul.f32 0.0078125, %v1422_v54 }
 0x8f5   : > { %2405 = vrsqrt.f32 %v1425_v55  ;;  %v1426_v57 = vadd.f32 1e-05, %v1424_v56 }
 0x8f7   : > { %2407 = vrsqrt.f32 %v1426_v57 }
 0x8ff   : > { %v2406_v58 = vpop.eup %2405 }
 0x900   : > { %v1429_v60 = vmul.f32 %v2406_v58, %v1415_v25 }
 0x901   : > { %v2408_v59 = vpop.eup %2407 }
 0x902   : > { %v1430_v61 = vmul.f32 %v2408_v59, %v1416_v27 }
 0x904   : > { %v1431_v62 = vpack.c.bf16 %v1430_v61, %v1429_v60 }
 0x906   : > { %1561 = vmatmul.mubr.bf16.vlgmr.msra.gmra.mrb[28].mxu1 %v1431_v62 }
 0x9d9   : > { %v1562_v48 = vpop.f32.mrb[28].mxu1 }
 0x9da   : > { %v1564_v3 = vpop.f32.mrb[29].mxu1  ;;  %v1571_v7 = vmax.f32 %v1562_v48, 0.0 }
 0x9db   : > { %v1566_v6 = vpop.f32.mrb[30].mxu1  ;;  %v1572_v10 = vmax.f32 %v1564_v3, 0.0 }
 0x9dc   : > { %v1573_v8 = vmax.f32 %v1566_v6, 0.0  ;;  %v1568_v9 = vpop.f32.mrb[31].mxu1 }
 0x9dd   : > { %v1574_v11 = vmax.f32 %v1568_v9, 0.0 }
 0x9de   : > { %v1575_v12 = vpack.c.bf16 %v1573_v8, %v1571_v7 }
 0x9df   : > { %v1576_v13 = vpack.c.bf16 %v1574_v11, %v1572_v10 }
 0x9e1   : > { %1737 = vmatprep.mubr.bf16.mxu0 %v1576_v13 }
 0x9e2   : > { %1738 = vmatmul.mubr.bf16.vlgmr.msra.gmra.mrb[16].mxu0 %v1575_v12 }
 0xab5   : > { %v2079_v14 = vpop.f32.mrb[16].mxu0 }
 0xab6   : > { %v2080_v15 = vpop.f32.mrb[17].mxu0 }
 0xab7   : > { %v2081_v16 = vadd.f32 %v2080_v15, %v2079_v14  ;;  %v2082_v17 = vpop.f32.mrb[18].mxu0 }
 0xab8   : > { %v2083_v18 = vpop.f32.mrb[19].mxu0 }
 0xab9   : > { %v2084_v19 = vadd.f32 %v2083_v18, %v2082_v17  ;;  %v1746_v20 = vadd.f32 %v2081_v16, %v1429_v60 }
 0xabb   : > { %1748 = vadd.xlane.f32.xlu0 %v1746_v20  ;;  %v1747_v21 = vadd.f32 %v2084_v19, %v1430_v61 }
 0xabd   : > { %1750 = vadd.xlane.f32.xlu1 %v1747_v21 }
 0xb48   : > { %v1749_v4 = vpop.xlane.xlu0 %1748 }
 0xb49   : > { %v1752_v5 = vmul.f32 0.0078125, %v1749_v4 }
 0xb4a   : > { %v1751_v23 = vpop.xlane.xlu1 %1750 }
 0xb4b   : > { %v1754_v24 = vsub.f32 %v1746_v20, %v1752_v5  ;;  %v1753_v25 = vmul.f32 0.0078125, %v1751_v23 }
 0xb4d   : > { %v1755_v26 = vsub.f32 %v1747_v21, %v1753_v25  ;;  %v1756_v27 = vmul.f32 %v1754_v24, %v1754_v24 }
 0xb4f   : > { %1758 = vadd.xlane.f32.xlu0 %v1756_v27  ;;  %v1757_v28 = vmul.f32 %v1755_v26, %v1755_v26 }
 0xb51   : > { %1760 = vadd.xlane.f32.xlu1 %v1757_v28 }
 0xbdc   : > { %v1759_v29 = vpop.xlane.xlu0 %1758 }
 0xbdd   : > { %v1762_v30 = vmul.f32 0.0078125, %v1759_v29 }
 0xbde   : > { %v1761_v31 = vpop.xlane.xlu1 %1760 }
 0xbdf   : > { %v1764_v22 = vadd.f32 1e-05, %v1762_v30  ;;  %v1763_v32 = vmul.f32 0.0078125, %v1761_v31 }
 0xbe1   : > { %2409 = vrsqrt.f32 %v1764_v22  ;;  %v1765_v33 = vadd.f32 1e-05, %v1763_v32 }
 0xbe3   : > { %2411 = vrsqrt.f32 %v1765_v33 }
 0xbea   : > { %1775 = sbr.rel (%p2011_p4) target bundleno = 3057 (0xbf1), region = 80 }
 0xbeb   : > { %v2410_v34 = vpop.eup %2409 }
 0xbec   : > { %v1768_v35 = vmul.f32 %v2410_v34, %v1754_v24 }
 0xbed   : > { %v2412_v36 = vpop.eup %2411 }
 0xbee   : > { %1770 = vst [vmem:[#allocation2] sm:$0xff] %v1768_v35  ;;  %v1769_v37 = vmul.f32 %v2412_v36, %v1755_v26  ;;  %1776 = vst [vmem:[#allocation13] sm:$0xff] (!%p2011_p4), %v1768_v35 }
 0xbf0   : > { %1771 = vst [vmem:[#allocation2 + $0x8] sm:$0xff] %v1769_v37  ;;  %1777 = vst [vmem:[#allocation13 + $0x8] sm:$0xff] (!%p2011_p4), %v1769_v37 }
 0xbf1 PF: > { %p2247_p11 = scmp.eq.s32.totalorder %s2836_s24, 1  ;;  %s2652_s16 = smov [#allocation13]  }
 0xbf2   : > { %s1784_s25 = sshll.u32 %s2652_s16, 4  ;;  %s1785_s25 = int_to_ptr.vmem [resolvable:$true] %s1784_s25 }
 0xbf3   : > { %s2561_s6 = scalar_lea.vmem %s1785_s25, 256  ;;  %p2568_p2 = scmp.lt.s32.totalorder %s1785_s25, %s1785_s25 }
 0xbf4   : > { %p2562_p8 = scmp.ne.s32.totalorder %s1785_s25, %s2561_s6  ;;  %p2569_p10 = scmp.lt.s32.totalorder %s2561_s6, %s2561_s6 }
 0xbf6   : > { %p2563_p6 = pnand %p2562_p8, %p2247_p11  ;;  %p2570_p1 = por %p2569_p10, %p2568_p2 }
 0xbf8   : > { %p2564_p7 = pneg %p2563_p6 }
 0xbfa   : > { %p2571_p13 = pnand %p2570_p1, %p2564_p7 }
 0xbfc   : > { %2574 = shalt.err (!%p2571_p13)
}
 0xbfd   : > { %s2575_s4 = scalar_lea.hbm %s3182_s8, 256 }
 0xbfe   : > { %p2576_p12 = scmp.ne.s32.totalorder %s3182_s8, %s2575_s4  ;;  %p2581_p3 = scmp.lt.u32.totalorder %s2575_s4, %s3182_s8 }
 0xc00   : > { %p2577_p0 = pnand %p2576_p12, %p2247_p11 }
 0xc02   : > { %p2578_p9 = pneg %p2577_p0 }
 0xc04   : > { %p2583_p5 = pnand %p2581_p3, %p2578_p9 }
 0xc06   : > { %2586 = shalt.err (!%p2583_p5)
}
 0xc07   : > { %s2653_s14 = smov 128   ;;  %s2654_s29 = smov 8  }
 0xc08   : > { %2224 = dma.vmem_to_hbm [thread:$0]  (%p2247_p11), %s1785_s25, 256, %s3182_s8, [#allocation6], %s2653_s14, %s2653_s14, %s2654_s29  }
 0xc09   : > { %2616 = dma.done.wait (%p2247_p11), [#allocation6], 256  }
 0xc0a   : > { %2618 = vsyncadd (%p2247_p11), [#allocation6], 4294967040 }
 0xc0b PF: > { %s3216_s30 = sld [smem:[#allocation19_spill]]  ;;  %s3217_s18 = sld [smem:[#allocation18_spill]] }
 0xc0c   : > { %s3218_s29 = sld [smem:[#allocation20_spill]]  ;;  %s3219_s27 = smov %s2625_s28 }
 0xc11   : > { %p23_p4 = scmp.ge.s32.totalorder %s3216_s30, 4   ;;  %s3220_s28 = smov %s3217_s18 }
 0xc13   :  { %25 = sbr.rel (!%p23_p4) target bundleno = 10 (0xa), region = 137 }
 0xc1a   :  { %1800 = vsyncpa [#allocation5], 1 }
 0xc1b   :  { %1802 = vsyncpa [#allocation5 + $0x1], 1 }
 0xc1c   :  { %1803 = vsyncpa [#allocation8], 1 }
 0xc1d   :  { %1805 = vsyncpa [#allocation8 + $0x1], 1 }
 0xc1e   :  { %1806 = vsyncpa [#allocation11], 1 }
 0xc1f   :  { %1808 = vsyncpa [#allocation11 + $0x1], 1 }
 0xc20   :  { %1809 = vsyncpa [#allocation6], 1 }
 0xc21   :  { %1811 = vsyncpa [#allocation6 + $0x1], 1 }

</bundles_post_ra>
